<compile_context>
chip_gen: v7x
topology: tpu7x:2x2x1
jax: 0.10.0
libtpu: 0.0.40
codegen_flags: <defaults>
</compile_context>

<pallas_src>
import functools

import jax
import jax.numpy as jnp
from jax.experimental import pallas as pl
from jax.experimental.pallas import tpu as pltpu


def _round_up(v, m):
    return (v + m - 1) // m * m


def _cdiv(a, b):
    return (a + b - 1) // b


def _vmem_capacity_bytes():
    try:
        cap = getattr(pltpu.get_tpu_info(), "vmem_capacity_bytes", None)
        if cap:
            return int(cap)
    except Exception:
        pass
    return 64 << 20   # conservative fallback (v7x); v5e/v6e have 128 MiB


def _conv_tap_kernel(w_ref, b_ref, x_ref, o_ref, *, K, stride, TOH, OW):
    """One (batch, row-tile) grid step: fused im2col as K*K tap matmuls.

    w_ref: (K*K, C, OCp)      bf16  resident (constant index_map) per-tap W^T
    b_ref: (1, 1, OCp)        f32   resident
    x_ref: (s*s, TIH, DW, C)  bf16  streamed channel-minor input window
    o_ref: (TOH, OW, OCp)     out   NHWC-ish output tile
    """
    ocp = o_ref.shape[-1]
    acc = None
    for kh in range(K):
        qh, rh = divmod(kh, stride)
        for kw in range(K):
            qw, rw = divmod(kw, stride)
            p = rh * stride + rw
            # Contiguous tap window (stride was decimated away in the wrapper).
            xs = x_ref[p, qh:qh + TOH, qw:qw + OW, :]          # (TOH, OW, C)
            xs = xs.reshape(TOH * OW, xs.shape[-1])            # minor dim kept
            # Patches streamed as LHS; small per-tap W^T stationary on the MXU.
            y = jnp.dot(xs, w_ref[kh * K + kw],
                        preferred_element_type=jnp.float32)    # (TOH*OW, OCp)
            acc = y if acc is None else acc + y
    acc = acc.reshape(TOH, OW, ocp) + b_ref[...]
    o_ref[...] = acc.astype(o_ref.dtype)


def conv_layer_forward(x, weight, bias, *, stride, padding=True,
                       out_dtype=jnp.float32):
    """Forward pass of ConvLayer (ReflectionPad2d + Conv2d). NCHW in / out."""
    N, C, H, W = x.shape
    OC, _, K, _ = weight.shape
    s = int(stride)

    # bf16 up-front: every wrapper-side layout op below moves half the bytes.
    xb = x.astype(jnp.bfloat16)
    if padding:
        p0 = (K - 1) // 2
        p1 = K - 1 - p0
        xb = jnp.pad(xb, ((0, 0), (0, 0), (p0, p1), (p0, p1)), mode="reflect")

    Hp, Wp = xb.shape[2], xb.shape[3]
    OH = (Hp - K) // s + 1
    OW = (Wp - K) // s + 1

    # ---- stride-phase decimation (pure layout, ~1x data). Every tap then
    # reads a contiguous window inside the kernel. ----
    qmax = (K - 1) // s
    DH, DW = OH + qmax, OW + qmax
    tH, tW = DH * s, DW * s
    xb = xb[:, :, :min(tH, Hp), :min(tW, Wp)]
    xb = jnp.pad(xb, ((0, 0), (0, 0), (0, tH - xb.shape[2]),
                      (0, tW - xb.shape[3])))
    P = s * s
    dec = xb.reshape(N, C, DH, s, DW, s).transpose(0, 3, 5, 2, 4, 1)
    dec = dec.reshape(N, P, DH, DW, C)   # dec[n,rh*s+rw,i,j,c]=xpad[n,c,i*s+rh,j*s+rw]

    OCp = _round_up(OC, 8)
    out_itemsize = 2 if out_dtype == jnp.bfloat16 else 4

    # ---- tile selection from actual VMEM capacity (v5e/v6e 128 MiB, v7x 64 MiB)
    vmem_cap = _vmem_capacity_bytes()
    budget = int(vmem_cap * 0.35)

    def block_vmem(toh):
        # native-tiling-padded footprint of the double-buffered streamed blocks
        tih = toh + qmax
        win_b = P * tih * _round_up(DW, 16) * _round_up(C, 128) * 2
        out_b = toh * _round_up(OW, 8) * _round_up(OCp, 128) * out_itemsize
        acc_b = _round_up(toh * OW, 8) * _round_up(OCp, 128) * 4
        return 2 * win_b + 2 * out_b + acc_b

    resident = 2 * (K * K * _round_up(C, 16) * _round_up(OCp, 128) * 2) + 4096

    # >= 2 grid steps when N == 1 so both v7x TensorCores get work.
    T = 1 if (N >= 2 or OH <= 4) else 2
    while True:
        TOH = _cdiv(OH, T)                      # <= T-1 padded rows total
        if TOH <= 4 or block_vmem(TOH) + resident <= budget:
            break
        T += 1
    OHp = T * TOH
    TIH = TOH + qmax

    # ---- non-overlapping row windows (duplication factor TIH/TOH, a few %) ----
    dec = jnp.pad(dec, ((0, 0), (0, 0), (0, OHp + qmax - DH), (0, 0), (0, 0)))
    win = jnp.stack([dec[:, :, t * TOH: t * TOH + TIH] for t in range(T)],
                    axis=1)                     # (N, T, P, TIH, DW, C) bf16

    # ---- per-tap transposed weights / bias (resident in VMEM) ----
    wt = jnp.transpose(weight, (2, 3, 1, 0)).reshape(K * K, C, OC)
    wt = jnp.pad(wt.astype(jnp.bfloat16), ((0, 0), (0, 0), (0, OCp - OC)))
    b_p = jnp.pad(bias.astype(jnp.float32), ((0, OCp - OC),)).reshape(1, 1, OCp)

    need = block_vmem(TOH) + resident + (4 << 20)
    vmem_limit = int(min(max(need, 32 << 20), vmem_cap * 3 // 4))

    kernel = functools.partial(_conv_tap_kernel, K=K, stride=s, TOH=TOH, OW=OW)

    out5 = pl.pallas_call(
        kernel,
        out_shape=jax.ShapeDtypeStruct((N, T, TOH, OW, OCp), out_dtype),
        grid_spec=pltpu.PrefetchScalarGridSpec(
            num_scalar_prefetch=0,
            grid=(N, T),
            in_specs=[
                # weights / bias: constant index_map -> stay resident in VMEM
                pl.BlockSpec((K * K, C, OCp), lambda n, t: (0, 0, 0)),
                pl.BlockSpec((1, 1, OCp), lambda n, t: (0, 0, 0)),
                # streamed input window for this (batch, row-tile)
                pl.BlockSpec((None, None, P, TIH, DW, C),
                             lambda n, t: (n, t, 0, 0, 0, 0)),
            ],
            out_specs=pl.BlockSpec((None, None, TOH, OW, OCp),
                                   lambda n, t: (n, t, 0, 0, 0)),
        ),
        compiler_params=pltpu.CompilerParams(
            dimension_semantics=("parallel", "parallel"),
            vmem_limit_bytes=vmem_limit),
    )(wt, b_p, win)

    # NHWC-ish -> NCHW: one XLA transpose outside the kernel, strip padding.
    out = out5.reshape(N, OHp, OW, OCp)[:, :OH, :, :OC]
    return jnp.transpose(out, (0, 3, 1, 2))


def _reference(x, weight, bias, *, stride, padding=True):
    """Pure-JAX f32 reference (lax.conv) for correctness checking."""
    OC, _, K, _ = weight.shape
    if padding:
        p0 = (K - 1) // 2
        p1 = K - 1 - p0
        x = jnp.pad(x, ((0, 0), (0, 0), (p0, p1), (p0, p1)), mode="reflect")
    out = jax.lax.conv_general_dilated(
        x, weight, (stride, stride), "VALID",
        dimension_numbers=("NCHW", "OIHW", "NCHW"))
    return out + bias.reshape(1, OC, 1, 1)


if __name__ == "__main__":
    key = jax.random.PRNGKey(0)
    k1, k2, k3, k4, k5, k6 = jax.random.split(key, 6)

    # Config 1: batch=2, in_ch=4, out_ch=8, spatial=16, k=3, stride=1, padding.
    x1 = jax.random.normal(k1, (2, 4, 16, 16), jnp.float32)
    w1 = jax.random.normal(k2, (8, 4, 3, 3), jnp.float32) * 0.1
    b1 = jax.random.normal(k3, (8,), jnp.float32) * 0.1
    f1 = jax.jit(functools.partial(conv_layer_forward, stride=1, padding=True))
    o1 = jax.block_until_ready(f1(x1, w1, b1))
    r1 = jax.block_until_ready(_reference(x1, w1, b1, stride=1, padding=True))
    assert o1.shape == r1.shape, (o1.shape, r1.shape)
    assert jnp.allclose(o1, r1, atol=3e-2, rtol=3e-2), "mismatch (stride=1)"

    # Config 2: stride=2 and out_ch not a multiple of 8 (exercises the
    # stride-phase decimation and the OC padding path).
    x2 = jax.random.normal(k4, (2, 4, 16, 16), jnp.float32)
    w2 = jax.random.normal(k5, (6, 4, 3, 3), jnp.float32) * 0.1
    b2 = jax.random.normal(k6, (6,), jnp.float32) * 0.1
    f2 = jax.jit(functools.partial(conv_layer_forward, stride=2, padding=True))
    o2 = jax.block_until_ready(f2(x2, w2, b2))
    r2 = jax.block_until_ready(_reference(x2, w2, b2, stride=2, padding=True))
    assert o2.shape == r2.shape, (o2.shape, r2.shape)
    assert jnp.allclose(o2, r2, atol=3e-2, rtol=3e-2), "mismatch (stride=2)"

    print("KERNEL_OK")
</pallas_src>

<mosaic_0001>
module attributes {stable_mosaic.version = 11 : i64} {
  func.func @_conv_tap_kernel(%arg0: i32, %arg1: i32, %arg2: memref<9x4x8xbf16, #tpu.memory_space<vmem>>, %arg3: memref<1x1x8xf32, #tpu.memory_space<vmem>>, %arg4: memref<1x1x1x18x18x4xbf16, #tpu.memory_space<vmem>>, %arg5: memref<1x1x16x16x8xf32, #tpu.memory_space<vmem>>) attributes {dimension_semantics = [#tpu.dimension_semantics<parallel>, #tpu.dimension_semantics<parallel>], iteration_bounds = array<i64: 2, 1>, scalar_prefetch = 0 : i64, scratch_operands = 0 : i64, tpu.core_type = #tpu.core_type<tc>, window_params = [{pipeline_mode = #tpu.pipeline_mode<synchronous>, transform_indices = @transform_0, window_bounds = array<i64: 9, 4, 8>}, {pipeline_mode = #tpu.pipeline_mode<synchronous>, transform_indices = @transform_1, window_bounds = array<i64: 1, 1, 8>}, {transform_indices = @transform_2, window_bounds = array<i64: 1, 1, 1, 18, 18, 4>}, {transform_indices = @transform_3, window_bounds = array<i64: 1, 1, 16, 16, 8>}]} {
    %c0 = arith.constant 0 : index
    %c0_0 = arith.constant 0 : index
    %c0_1 = arith.constant 0 : index
    %c0_2 = arith.constant 0 : index
    %c0_3 = arith.constant 0 : index
    %c0_4 = arith.constant 0 : index
    %0 = vector.load %arg4[%c0, %c0_0, %c0_1, %c0_2, %c0_3, %c0_4] : memref<1x1x1x18x18x4xbf16, #tpu.memory_space<vmem>>, vector<1x1x1x16x16x4xbf16>
    %1 = vector.shape_cast %0 : vector<1x1x1x16x16x4xbf16> to vector<16x16x4xbf16>
    %2 = vector.shape_cast %1 : vector<16x16x4xbf16> to vector<256x4xbf16>
    %c0_5 = arith.constant 0 : index
    %c0_6 = arith.constant 0 : index
    %c0_7 = arith.constant 0 : index
    %3 = vector.load %arg2[%c0_5, %c0_6, %c0_7] : memref<9x4x8xbf16, #tpu.memory_space<vmem>>, vector<1x4x8xbf16>
    %4 = vector.shape_cast %3 : vector<1x4x8xbf16> to vector<4x8xbf16>
    %cst = arith.constant dense<0.000000e+00> : vector<256x8xf32>
    %5 = tpu.matmul %2, %4, %cst {dimension_numbers = #tpu.dot_dimension_numbers<[1], [0], [0], [1], [0, 0, 1, 1], [], []>} : vector<256x4xbf16>, vector<4x8xbf16>, vector<256x8xf32> -> vector<256x8xf32>
    %c0_8 = arith.constant 0 : index
    %c0_9 = arith.constant 0 : index
    %c0_10 = arith.constant 0 : index
    %c0_11 = arith.constant 0 : index
    %c1 = arith.constant 1 : index
    %c0_12 = arith.constant 0 : index
    %6 = vector.load %arg4[%c0_8, %c0_9, %c0_10, %c0_11, %c1, %c0_12] : memref<1x1x1x18x18x4xbf16, #tpu.memory_space<vmem>>, vector<1x1x1x16x16x4xbf16>
    %7 = vector.shape_cast %6 : vector<1x1x1x16x16x4xbf16> to vector<16x16x4xbf16>
    %8 = vector.shape_cast %7 : vector<16x16x4xbf16> to vector<256x4xbf16>
    %c1_13 = arith.constant 1 : index
    %c0_14 = arith.constant 0 : index
    %c0_15 = arith.constant 0 : index
    %9 = vector.load %arg2[%c1_13, %c0_14, %c0_15] : memref<9x4x8xbf16, #tpu.memory_space<vmem>>, vector<1x4x8xbf16>
    %10 = vector.shape_cast %9 : vector<1x4x8xbf16> to vector<4x8xbf16>
    %cst_16 = arith.constant dense<0.000000e+00> : vector<256x8xf32>
    %11 = tpu.matmul %8, %10, %cst_16 {dimension_numbers = #tpu.dot_dimension_numbers<[1], [0], [0], [1], [0, 0, 1, 1], [], []>} : vector<256x4xbf16>, vector<4x8xbf16>, vector<256x8xf32> -> vector<256x8xf32>
    %12 = arith.addf %5, %11 : vector<256x8xf32>
    %c0_17 = arith.constant 0 : index
    %c0_18 = arith.constant 0 : index
    %c0_19 = arith.constant 0 : index
    %c0_20 = arith.constant 0 : index
    %c2 = arith.constant 2 : index
    %c0_21 = arith.constant 0 : index
    %13 = vector.load %arg4[%c0_17, %c0_18, %c0_19, %c0_20, %c2, %c0_21] : memref<1x1x1x18x18x4xbf16, #tpu.memory_space<vmem>>, vector<1x1x1x16x16x4xbf16>
    %14 = vector.shape_cast %13 : vector<1x1x1x16x16x4xbf16> to vector<16x16x4xbf16>
    %15 = vector.shape_cast %14 : vector<16x16x4xbf16> to vector<256x4xbf16>
    %c2_22 = arith.constant 2 : index
    %c0_23 = arith.constant 0 : index
    %c0_24 = arith.constant 0 : index
    %16 = vector.load %arg2[%c2_22, %c0_23, %c0_24] : memref<9x4x8xbf16, #tpu.memory_space<vmem>>, vector<1x4x8xbf16>
    %17 = vector.shape_cast %16 : vector<1x4x8xbf16> to vector<4x8xbf16>
    %cst_25 = arith.constant dense<0.000000e+00> : vector<256x8xf32>
    %18 = tpu.matmul %15, %17, %cst_25 {dimension_numbers = #tpu.dot_dimension_numbers<[1], [0], [0], [1], [0, 0, 1, 1], [], []>} : vector<256x4xbf16>, vector<4x8xbf16>, vector<256x8xf32> -> vector<256x8xf32>
    %19 = arith.addf %12, %18 : vector<256x8xf32>
    %c0_26 = arith.constant 0 : index
    %c0_27 = arith.constant 0 : index
    %c0_28 = arith.constant 0 : index
    %c1_29 = arith.constant 1 : index
    %c0_30 = arith.constant 0 : index
    %c0_31 = arith.constant 0 : index
    %20 = vector.load %arg4[%c0_26, %c0_27, %c0_28, %c1_29, %c0_30, %c0_31] : memref<1x1x1x18x18x4xbf16, #tpu.memory_space<vmem>>, vector<1x1x1x16x16x4xbf16>
    %21 = vector.shape_cast %20 : vector<1x1x1x16x16x4xbf16> to vector<16x16x4xbf16>
    %22 = vector.shape_cast %21 : vector<16x16x4xbf16> to vector<256x4xbf16>
    %c3 = arith.constant 3 : index
    %c0_32 = arith.constant 0 : index
    %c0_33 = arith.constant 0 : index
    %23 = vector.load %arg2[%c3, %c0_32, %c0_33] : memref<9x4x8xbf16, #tpu.memory_space<vmem>>, vector<1x4x8xbf16>
    %24 = vector.shape_cast %23 : vector<1x4x8xbf16> to vector<4x8xbf16>
    %cst_34 = arith.constant dense<0.000000e+00> : vector<256x8xf32>
    %25 = tpu.matmul %22, %24, %cst_34 {dimension_numbers = #tpu.dot_dimension_numbers<[1], [0], [0], [1], [0, 0, 1, 1], [], []>} : vector<256x4xbf16>, vector<4x8xbf16>, vector<256x8xf32> -> vector<256x8xf32>
    %26 = arith.addf %19, %25 : vector<256x8xf32>
    %c0_35 = arith.constant 0 : index
    %c0_36 = arith.constant 0 : index
    %c0_37 = arith.constant 0 : index
    %c1_38 = arith.constant 1 : index
    %c1_39 = arith.constant 1 : index
    %c0_40 = arith.constant 0 : index
    %27 = vector.load %arg4[%c0_35, %c0_36, %c0_37, %c1_38, %c1_39, %c0_40] : memref<1x1x1x18x18x4xbf16, #tpu.memory_space<vmem>>, vector<1x1x1x16x16x4xbf16>
    %28 = vector.shape_cast %27 : vector<1x1x1x16x16x4xbf16> to vector<16x16x4xbf16>
    %29 = vector.shape_cast %28 : vector<16x16x4xbf16> to vector<256x4xbf16>
    %c4 = arith.constant 4 : index
    %c0_41 = arith.constant 0 : index
    %c0_42 = arith.constant 0 : index
    %30 = vector.load %arg2[%c4, %c0_41, %c0_42] : memref<9x4x8xbf16, #tpu.memory_space<vmem>>, vector<1x4x8xbf16>
    %31 = vector.shape_cast %30 : vector<1x4x8xbf16> to vector<4x8xbf16>
    %cst_43 = arith.constant dense<0.000000e+00> : vector<256x8xf32>
    %32 = tpu.matmul %29, %31, %cst_43 {dimension_numbers = #tpu.dot_dimension_numbers<[1], [0], [0], [1], [0, 0, 1, 1], [], []>} : vector<256x4xbf16>, vector<4x8xbf16>, vector<256x8xf32> -> vector<256x8xf32>
    %33 = arith.addf %26, %32 : vector<256x8xf32>
    %c0_44 = arith.constant 0 : index
    %c0_45 = arith.constant 0 : index
    %c0_46 = arith.constant 0 : index
    %c1_47 = arith.constant 1 : index
    %c2_48 = arith.constant 2 : index
    %c0_49 = arith.constant 0 : index
    %34 = vector.load %arg4[%c0_44, %c0_45, %c0_46, %c1_47, %c2_48, %c0_49] : memref<1x1x1x18x18x4xbf16, #tpu.memory_space<vmem>>, vector<1x1x1x16x16x4xbf16>
    %35 = vector.shape_cast %34 : vector<1x1x1x16x16x4xbf16> to vector<16x16x4xbf16>
    %36 = vector.shape_cast %35 : vector<16x16x4xbf16> to vector<256x4xbf16>
    %c5 = arith.constant 5 : index
    %c0_50 = arith.constant 0 : index
    %c0_51 = arith.constant 0 : index
    %37 = vector.load %arg2[%c5, %c0_50, %c0_51] : memref<9x4x8xbf16, #tpu.memory_space<vmem>>, vector<1x4x8xbf16>
    %38 = vector.shape_cast %37 : vector<1x4x8xbf16> to vector<4x8xbf16>
    %cst_52 = arith.constant dense<0.000000e+00> : vector<256x8xf32>
    %39 = tpu.matmul %36, %38, %cst_52 {dimension_numbers = #tpu.dot_dimension_numbers<[1], [0], [0], [1], [0, 0, 1, 1], [], []>} : vector<256x4xbf16>, vector<4x8xbf16>, vector<256x8xf32> -> vector<256x8xf32>
    %40 = arith.addf %33, %39 : vector<256x8xf32>
    %c0_53 = arith.constant 0 : index
    %c0_54 = arith.constant 0 : index
    %c0_55 = arith.constant 0 : index
    %c2_56 = arith.constant 2 : index
    %c0_57 = arith.constant 0 : index
    %c0_58 = arith.constant 0 : index
    %41 = vector.load %arg4[%c0_53, %c0_54, %c0_55, %c2_56, %c0_57, %c0_58] : memref<1x1x1x18x18x4xbf16, #tpu.memory_space<vmem>>, vector<1x1x1x16x16x4xbf16>
    %42 = vector.shape_cast %41 : vector<1x1x1x16x16x4xbf16> to vector<16x16x4xbf16>
    %43 = vector.shape_cast %42 : vector<16x16x4xbf16> to vector<256x4xbf16>
    %c6 = arith.constant 6 : index
    %c0_59 = arith.constant 0 : index
    %c0_60 = arith.constant 0 : index
    %44 = vector.load %arg2[%c6, %c0_59, %c0_60] : memref<9x4x8xbf16, #tpu.memory_space<vmem>>, vector<1x4x8xbf16>
    %45 = vector.shape_cast %44 : vector<1x4x8xbf16> to vector<4x8xbf16>
    %cst_61 = arith.constant dense<0.000000e+00> : vector<256x8xf32>
    %46 = tpu.matmul %43, %45, %cst_61 {dimension_numbers = #tpu.dot_dimension_numbers<[1], [0], [0], [1], [0, 0, 1, 1], [], []>} : vector<256x4xbf16>, vector<4x8xbf16>, vector<256x8xf32> -> vector<256x8xf32>
    %47 = arith.addf %40, %46 : vector<256x8xf32>
    %c0_62 = arith.constant 0 : index
    %c0_63 = arith.constant 0 : index
    %c0_64 = arith.constant 0 : index
    %c2_65 = arith.constant 2 : index
    %c1_66 = arith.constant 1 : index
    %c0_67 = arith.constant 0 : index
    %48 = vector.load %arg4[%c0_62, %c0_63, %c0_64, %c2_65, %c1_66, %c0_67] : memref<1x1x1x18x18x4xbf16, #tpu.memory_space<vmem>>, vector<1x1x1x16x16x4xbf16>
    %49 = vector.shape_cast %48 : vector<1x1x1x16x16x4xbf16> to vector<16x16x4xbf16>
    %50 = vector.shape_cast %49 : vector<16x16x4xbf16> to vector<256x4xbf16>
    %c7 = arith.constant 7 : index
    %c0_68 = arith.constant 0 : index
    %c0_69 = arith.constant 0 : index
    %51 = vector.load %arg2[%c7, %c0_68, %c0_69] : memref<9x4x8xbf16, #tpu.memory_space<vmem>>, vector<1x4x8xbf16>
    %52 = vector.shape_cast %51 : vector<1x4x8xbf16> to vector<4x8xbf16>
    %cst_70 = arith.constant dense<0.000000e+00> : vector<256x8xf32>
    %53 = tpu.matmul %50, %52, %cst_70 {dimension_numbers = #tpu.dot_dimension_numbers<[1], [0], [0], [1], [0, 0, 1, 1], [], []>} : vector<256x4xbf16>, vector<4x8xbf16>, vector<256x8xf32> -> vector<256x8xf32>
    %54 = arith.addf %47, %53 : vector<256x8xf32>
    %c0_71 = arith.constant 0 : index
    %c0_72 = arith.constant 0 : index
    %c0_73 = arith.constant 0 : index
    %c2_74 = arith.constant 2 : index
    %c2_75 = arith.constant 2 : index
    %c0_76 = arith.constant 0 : index
    %55 = vector.load %arg4[%c0_71, %c0_72, %c0_73, %c2_74, %c2_75, %c0_76] : memref<1x1x1x18x18x4xbf16, #tpu.memory_space<vmem>>, vector<1x1x1x16x16x4xbf16>
    %56 = vector.shape_cast %55 : vector<1x1x1x16x16x4xbf16> to vector<16x16x4xbf16>
    %57 = vector.shape_cast %56 : vector<16x16x4xbf16> to vector<256x4xbf16>
    %c8 = arith.constant 8 : index
    %c0_77 = arith.constant 0 : index
    %c0_78 = arith.constant 0 : index
    %58 = vector.load %arg2[%c8, %c0_77, %c0_78] : memref<9x4x8xbf16, #tpu.memory_space<vmem>>, vector<1x4x8xbf16>
    %59 = vector.shape_cast %58 : vector<1x4x8xbf16> to vector<4x8xbf16>
    %cst_79 = arith.constant dense<0.000000e+00> : vector<256x8xf32>
    %60 = tpu.matmul %57, %59, %cst_79 {dimension_numbers = #tpu.dot_dimension_numbers<[1], [0], [0], [1], [0, 0, 1, 1], [], []>} : vector<256x4xbf16>, vector<4x8xbf16>, vector<256x8xf32> -> vector<256x8xf32>
    %61 = arith.addf %54, %60 : vector<256x8xf32>
    %62 = vector.shape_cast %61 : vector<256x8xf32> to vector<16x16x8xf32>
    %c0_80 = arith.constant 0 : index
    %c0_81 = arith.constant 0 : index
    %c0_82 = arith.constant 0 : index
    %63 = vector.load %arg3[%c0_80, %c0_81, %c0_82] : memref<1x1x8xf32, #tpu.memory_space<vmem>>, vector<1x1x8xf32>
    %64 = vector.broadcast %63 : vector<1x1x8xf32> to vector<16x16x8xf32>
    %65 = arith.addf %62, %64 : vector<16x16x8xf32>
    %c0_83 = arith.constant 0 : index
    %c0_84 = arith.constant 0 : index
    %c0_85 = arith.constant 0 : index
    %c0_86 = arith.constant 0 : index
    %c0_87 = arith.constant 0 : index
    %66 = vector.load %arg5[%c0_83, %c0_84, %c0_85, %c0_86, %c0_87] : memref<1x1x16x16x8xf32, #tpu.memory_space<vmem>>, vector<1x1x16x16x8xf32>
    %67 = vector.shape_cast %66 : vector<1x1x16x16x8xf32> to vector<16x16x8xf32>
    %68 = vector.shape_cast %65 : vector<16x16x8xf32> to vector<1x1x16x16x8xf32>
    tpu.vector_store %arg5[%c0_83, %c0_84, %c0_85, %c0_86, %c0_87], %68 {strides = array<i32>} : memref<1x1x16x16x8xf32, #tpu.memory_space<vmem>>, vector<1x1x16x16x8xf32>,
    return
  }
  func.func @transform_0(%arg0: i32, %arg1: i32) -> (i32, i32, i32) {
    %c0_i32 = arith.constant 0 : i32
    %c0_i32_0 = arith.constant 0 : i32
    %c0_i32_1 = arith.constant 0 : i32
    %c0_i32_2 = arith.constant 0 : i32
    return %c0_i32, %c0_i32_0, %c0_i32_1 : i32, i32, i32
  }
  func.func @transform_1(%arg0: i32, %arg1: i32) -> (i32, i32, i32) {
    %c0_i32 = arith.constant 0 : i32
    %c0_i32_0 = arith.constant 0 : i32
    %c0_i32_1 = arith.constant 0 : i32
    %c0_i32_2 = arith.constant 0 : i32
    return %c0_i32, %c0_i32_0, %c0_i32_1 : i32, i32, i32
  }
  func.func @transform_2(%arg0: i32, %arg1: i32) -> (i32, i32, i32, i32, i32, i32) {
    %c0_i32 = arith.constant 0 : i32
    %c0_i32_0 = arith.constant 0 : i32
    %c0_i32_1 = arith.constant 0 : i32
    %c0_i32_2 = arith.constant 0 : i32
    %c0_i32_3 = arith.constant 0 : i32
    return %arg0, %arg1, %c0_i32, %c0_i32_0, %c0_i32_1, %c0_i32_2 : i32, i32, i32, i32, i32, i32
  }
  func.func @transform_3(%arg0: i32, %arg1: i32) -> (i32, i32, i32, i32, i32) {
    %c0_i32 = arith.constant 0 : i32
    %c0_i32_0 = arith.constant 0 : i32
    %c0_i32_1 = arith.constant 0 : i32
    %c0_i32_2 = arith.constant 0 : i32
    return %arg0, %arg1, %c0_i32, %c0_i32_0, %c0_i32_1 : i32, i32, i32, i32, i32
  }
}

</mosaic_0001>

<bundles_post_ra>
// kernel: conv_layer_forward.1
= control target key start
LH: loop header
LB: loop body
LE: loop exit
PB: predicated region body
PF: predicated region fallthrough
CT: control target
= control target key end

     0   :  { %s6380_s12 = smov 0   ;;  %s6382_s13 = smov 0   ;;  %s8217_s0 = inlined_call_operand.vmem [shape: bf16[9,4,8], index: 0, kind: input, shape index: {}]   ;;  %s8218_s1 = inlined_call_operand.vmem [shape: f32[1,1,8], index: 1, kind: input, shape index: {}]   ;;  %s8219_s2 = inlined_call_operand.vmem [shape: bf16[2,1,1,18,18,4], index: 2, kind: input, shape index: {}]   ;;  %s8220_s3 = inlined_call_operand.vmem [shape: f32[2,1,16,16,8], index: 3, kind: output, shape index: {}]  }
   0x1   :  { %s6384_s14 = smov 0  }
   0x2 LB: > { %s25_s15 = sadd.s32 1, %s6354_s13  ;;  %p4935_p0 = scmp.ge.s32.totalorder %s6358_s14, 1  ;;  %s6358_s14 = sphi %s6384_s14, %s13_s14   ;;  %s6354_s13 = sphi %s6382_s13, %s8289_s13   ;;  %s6350_s12 = sphi %s6380_s12, %s8288_s12  }
   0x3   : > { %p27_p1 = scmp.ge.s32.totalorder %s25_s15, 2  ;;  %p157_p2 = scmp.lt.s32.totalorder %s6358_s14, 3 }
   0x5   : > { %s8291_s15 = smov (%p27_p1, %s25_s15), 0  ;;  %p158_p3 = pnand %p4935_p0, %p157_p2 }
   0x7   : > { %161 = sbr.rel (%p158_p3) target bundleno = 586 (0x24a), region = 32 }
   0xe   : > { %v4939_v0 = vld [vmem:[%s8217_s0 + $0x2] sm:$0x3]  ;;  %vm743_vm0 = vcmask 1041408   ;;  %v5166_v1 = vld [vmem:[%s8217_s0 + $0x8] sm:$0x3]  ;;  %p189_p4 = scmp.lt.s32.totalorder %s6350_s12, 1 }
   0xf   : > { %6196 = vmatprep.subr.msk.bf16.mxu1 %vm743_vm0, %v4939_v0  ;;  %6200 = vmatprep.subr.msk.bf16.mxu0 %vm743_vm0, %v5166_v1  ;;  %v745_v2 = vsel %vm743_vm0, %v4939_v0, 0  ;;  %v6408_v3 = vsel %vm743_vm0, %v5166_v1, 0  ;;  %v240_v4 = vld [vmem:[%s8217_s0] sm:$0x3]  ;;  %v5231_v5 = vld [vmem:[%s8217_s0 + $0xa] sm:$0x3] }
  0x10   : > { %8234 = vst [vmem:[#allocation2_spill] sm:$0xff] %v6408_v3  ;;  %5633 = vmatpush3.bf16.msra.mxu1 %v745_v2  ;;  %5769 = vmatpush3.bf16.msra.mxu0 %v6408_v3  ;;  %s8293_s12 = smov (!%p189_p4, %s6350_s12), 1  ;;  %vm257_vm1 = vsmask.f32 3328  ;;  %vm258_vm2 = vsmask.f32 7440 }
  0x11   : > { %6197 = vmatprep.subr.msk.bf16.mxu1 %vm743_vm0, %v240_v4  ;;  %6202 = vmatprep.subr.msk.bf16.mxu0 %vm743_vm0, %v5231_v5  ;;  %s6206_s24 = smul.u32 216, %s8293_s12  ;;  %vm694_vm3 = vcmask 31744   ;;  %v6438_v17 = vsel %vm743_vm0, %v240_v4, 0  ;;  %v6444_v26 = vld [vmem:[%s8217_s0 + $0xc] sm:$0x3]  ;;  %vm6451_vm4 = vmor %vm257_vm1, %vm258_vm2  ;;  %v6457_v37 = vsel %vm743_vm0, %v5231_v5, 0 }
  0x12   : > { %v6461_v41 = vsel %vm743_vm0, %v6444_v26, 0  ;;  %vm1248_vm5 = vcmask 1042432   ;;  %vm1249_vm6 = vcmask 1046532   ;;  %s5478_s19 = sshll.u32 %s8293_s12, 8  ;;  %vm4806_vm8 = vcmask 64512  }
  0x13   : > { %s6425_s27 = scalar_lea.vmem %s8219_s2, %s6206_s24  ;;  %vm6677_vm7 = vmor %vm1248_vm5, %vm1249_vm6  ;;  %s8110_s24 = scalar_lea.vmem %s8220_s3, %s5478_s19 }
  0x14   : > { %v208_v6 = vld [vmem:[%s6425_s27] sm:$0xf]  ;;  %v209_v7 = vld [vmem:[%s6425_s27 + $0x4] sm:$0xf]  ;;  %v241_v8 = vld [vmem:[%s6425_s27 + $0x8] sm:$0x1] }
  0x15   : > { %v261_v9 = vshrl.u32 %v208_v6, 16  ;;  %v264_v10 = vshll.u32 %v208_v6, 16  ;;  %v270_v11 = vshll.u32 %v209_v7, 16  ;;  %v274_v12 = vshrl.u32 %v209_v7, 16  ;;  %v5118_v13 = vld [vmem:[%s6425_s27 + $0xc] sm:$0xf] }
  0x16   : > { %v280_v14 = vshll.u32 %v241_v8, 16  ;;  %v6432_v15 = vld [vmem:[%s6425_s27 + $0x10] sm:$0xf]  ;;  %v6435_v16 = vld [vmem:[%s6425_s27 + $0x14] sm:$0x1]  ;;  %v2065_v23 = vshrl.u32 %v5118_v13, 16 }
  0x17   : > { %v263_v18 = vrot.slane %v261_v9, 4  ;;  %v266_v19 = vrot.slane %v264_v10, 5  ;;  %v272_v20 = vrot.slane %v270_v11, 5  ;;  %v276_v21 = vrot.slane %v274_v12, 4  ;;  %v210_v31 = vld [vmem:[%s6425_s27 + $0xc] sm:$0xf] }
  0x18   : > { %v282_v22 = vrot.slane %v280_v14, 5  ;;  %v2068_v24 = vshll.u32 %v5118_v13, 16  ;;  %v2074_v25 = vshll.u32 %v6432_v15, 16  ;;  %v2078_v29 = vshrl.u32 %v6432_v15, 16  ;;  %v211_v36 = vld [vmem:[%s6425_s27 + $0x10] sm:$0xf] }
  0x19   : > { %v267_v27 = vor.u32 %v266_v19, %v263_v18  ;;  %v277_v28 = vor.u32 %v276_v21, %v272_v20  ;;  %v2084_v30 = vshll.u32 %v6435_v16, 16  ;;  %v2067_v33 = vrot.slane %v2065_v23, 4  ;;  %v242_v44 = vld [vmem:[%s6425_s27 + $0x14] sm:$0x1]  ;;  %v5121_v55 = vld [vmem:[%s6425_s27 + $0x18] sm:$0xf] }
  0x1a   : > { %v2070_v34 = vrot.slane %v2068_v24, 5  ;;  %v2076_v35 = vrot.slane %v2074_v25, 5  ;;  %v2080_v40 = vrot.slane %v2078_v29, 4  ;;  %v285_v45 = vshrl.u32 %v210_v31, 16  ;;  %v6470_v60 = vld [vmem:[%s6425_s27 + $0x1c] sm:$0xf] }
  0x1b   : > { %v268_v38 = vrot.slane %v267_v27, 4  ;;  %v278_v39 = vrot.slane %v277_v28, 4  ;;  %v2086_v43 = vrot.slane %v2084_v30, 5  ;;  %v288_v46 = vshll.u32 %v210_v31, 16  ;;  %v6478_v1 = vld [vmem:[%s6425_s27 + $0x20] sm:$0x1] }
  0x1c   : > { %v2071_v42 = vor.u32 %v2070_v34, %v2067_v33  ;;  %v2081_v49 = vor.u32 %v2080_v40, %v2076_v35  ;;  %v294_v50 = vshll.u32 %v211_v36, 16  ;;  %v287_v53 = vrot.slane %v285_v45, 4  ;;  %v212_v18 = vld [vmem:[%s6425_s27 + $0x18] sm:$0xf]  ;;  %v213_v23 = vld [vmem:[%s6425_s27 + $0x1c] sm:$0xf] }
  0x1d   : > { %v273_v47 = vsel %vm6451_vm4, %v268_v38, %v272_v20  ;;  %v283_v48 = vsel %vm6451_vm4, %v278_v39, %v282_v22  ;;  %v290_v54 = vrot.slane %v288_v46, 5  ;;  %v298_v58 = vshrl.u32 %v211_v36, 16  ;;  %v243_v31 = vld [vmem:[%s6425_s27 + $0x20] sm:$0x1]  ;;  %v5124_v40 = vld [vmem:[%s6425_s27 + $0x24] sm:$0xf] }
  0x1e   : > { %v4940_v51 = vcombine.low %v273_v47, %v283_v48  ;;  %v2072_v52 = vrot.slane %v2071_v42, 4  ;;  %v2082_v56 = vrot.slane %v2081_v49, 4  ;;  %v296_v57 = vrot.slane %v294_v50, 5  ;;  %v6501_v46 = vld [vmem:[%s6425_s27 + $0x28] sm:$0xf] }
  0x1f   : > { %v304_v59 = vshll.u32 %v242_v44, 16  ;;  %v2808_v62 = vrot.slane %v6432_v15, 5  ;;  %v2811_v63 = vrot.slane %v6435_v16, 5  ;;  %v291_v0 = vor.u32 %v290_v54, %v287_v53  ;;  %v6510_v54 = vld [vmem:[%s6425_s27 + $0x2c] sm:$0x1] }
  0x20   : > { %5634 = vmatprep.mubr.msk.bf16.mxu1 %vm694_vm3, %v4940_v51  ;;  %v2077_v61 = vsel %vm6451_vm4, %v2072_v52, %v2076_v35  ;;  %v2087_v2 = vsel %vm6451_vm4, %v2082_v56, %v2086_v43  ;;  %v300_v4 = vrot.slane %v298_v58, 4  ;;  %v2089_v6 = vshrl.u32 %v5121_v55, 16  ;;  %v5020_v51 = vld [vmem:[%s8217_s0 + $0x4] sm:$0x3]  ;;  %v6710_v16 = vld [vmem:[%s6425_s27 + $0x7c] sm:$0xf] }
  0x21   : > { %v306_v5 = vrot.slane %v304_v59, 5  ;;  %v5167_v7 = vcombine.low %v2077_v61, %v2087_v2  ;;  %v292_v8 = vrot.slane %v291_v0, 4  ;;  %v2092_v9 = vshll.u32 %v5121_v55, 16  ;;  %v214_v0 = vld [vmem:[%s6425_s27 + $0x24] sm:$0xf] }
  0x22   : > { %v2098_v10 = vshll.u32 %v6470_v60, 16  ;;  %v301_v11 = vor.u32 %v300_v4, %v296_v57  ;;  %v2091_v12 = vrot.slane %v2089_v6, 4  ;;  %v2102_v13 = vshrl.u32 %v6470_v60, 16 }
  0x23   : > { %v2108_v14 = vshll.u32 %v6478_v1, 16  ;;  %5770 = vmatprep.mubr.msk.bf16.mxu0 %vm694_vm3, %v5167_v7  ;;  %v297_v19 = vsel %vm6451_vm4, %v292_v8, %v296_v57  ;;  %v2094_v20 = vrot.slane %v2092_v9, 5  ;;  %v2815_v22 = vrot.slane %v6470_v60, 5  ;;  %v215_v7 = vld [vmem:[%s6425_s27 + $0x28] sm:$0xf] }
  0x24   : > { %v2100_v21 = vrot.slane %v2098_v10, 5  ;;  %v302_v24 = vrot.slane %v301_v11, 4  ;;  %v2104_v25 = vrot.slane %v2102_v13, 4  ;;  %v2818_v28 = vrot.slane %v6478_v1, 5  ;;  %v244_v13 = vld [vmem:[%s6425_s27 + $0x2c] sm:$0x1] }
  0x25   : > { %v2110_v27 = vrot.slane %v2108_v14, 5  ;;  %v2095_v29 = vor.u32 %v2094_v20, %v2091_v12  ;;  %v6494_v30 = vrot.slane %v2815_v22, 4  ;;  %v309_v33 = vshrl.u32 %v212_v18, 16 }
  0x26   : > { %v312_v34 = vshll.u32 %v212_v18, 16  ;;  %v307_v35 = vsel %vm6451_vm4, %v302_v24, %v306_v5  ;;  %v2105_v36 = vor.u32 %v2104_v25, %v2100_v21  ;;  %v318_v38 = vshll.u32 %v213_v23, 16  ;;  %v5127_v24 = vld [vmem:[%s6425_s27 + $0x30] sm:$0xf] }
  0x27   : > { %v322_v39 = vshrl.u32 %v213_v23, 16  ;;  %v4941_v42 = vcombine.low %v297_v19, %v307_v35  ;;  %v2096_v43 = vrot.slane %v2095_v29, 4  ;;  %v311_v44 = vrot.slane %v309_v33, 4  ;;  %v6530_v33 = vld [vmem:[%s6425_s27 + $0x34] sm:$0xf] }
  0x28   : > { %v314_v45 = vrot.slane %v312_v34, 5  ;;  %v2106_v47 = vrot.slane %v2105_v36, 4  ;;  %v320_v48 = vrot.slane %v318_v38, 5  ;;  %v328_v50 = vshll.u32 %v243_v31, 16 }
  0x29   : > { %v324_v49 = vrot.slane %v322_v39, 4  ;;  %5635 = vmatmul.mubr.msk.bf16.vlgmr.msra.gmra.mrb[0].mxu1 %vm694_vm3, %v4941_v42  ;;  %v2101_v52 = vsel %vm6451_vm4, %v2096_v43, %v2100_v21  ;;  %v2113_v55 = vshrl.u32 %v5124_v40, 16  ;;  %v2116_v56 = vshll.u32 %v5124_v40, 16  ;;  %v6538_v40 = vld [vmem:[%s6425_s27 + $0x38] sm:$0x1] }
  0x2a   : > { %v315_v53 = vor.u32 %v314_v45, %v311_v44  ;;  %5667 = vmatpush3.bf16.msra.mxu1 %v6438_v17  ;;  %v2111_v57 = vsel %vm6451_vm4, %v2106_v47, %v2110_v27  ;;  %v330_v59 = vrot.slane %v328_v50, 5  ;;  %v2122_v61 = vshll.u32 %v6501_v46, 16 }
  0x2b   : > { %v325_v58 = vor.u32 %v324_v49, %v320_v48  ;;  %v5168_v2 = vcombine.low %v2101_v52, %v2111_v57  ;;  %v2115_v5 = vrot.slane %v2113_v55, 4  ;;  %v2118_v6 = vrot.slane %v2116_v56, 5  ;;  %6198 = vmatprep.subr.msk.bf16.mxu1 %vm743_vm0, %v5020_v51  ;;  %v216_v52 = vld [vmem:[%s6425_s27 + $0x30] sm:$0xf] }
  0x2c   : > { %v316_v4 = vrot.slane %v315_v53, 4  ;;  %v2124_v9 = vrot.slane %v2122_v61, 5  ;;  %v2126_v17 = vshrl.u32 %v6501_v46, 16  ;;  %v2132_v10 = vshll.u32 %v6510_v54, 16 }
  0x2d   : > { %v326_v8 = vrot.slane %v325_v58, 4  ;;  %5771 = vmatmul.mubr.msk.bf16.vlgmr.msra.gmra.mrb[0].mxu0 %vm694_vm3, %v5168_v2  ;;  %v2119_v12 = vor.u32 %v2118_v6, %v2115_v5  ;;  %v333_v14 = vshrl.u32 %v214_v0, 16  ;;  %v336_v18 = vshll.u32 %v214_v0, 16  ;;  %v217_v58 = vld [vmem:[%s6425_s27 + $0x34] sm:$0xf] }
  0x2e   : > { %v321_v11 = vsel %vm6451_vm4, %v316_v4, %v320_v48  ;;  %5803 = vmatpush3.bf16.msra.mxu0 %v6457_v37  ;;  %v2128_v20 = vrot.slane %v2126_v17, 4  ;;  %v2134_v21 = vrot.slane %v2132_v10, 5  ;;  %v342_v23 = vshll.u32 %v215_v7, 16  ;;  %v245_v4 = vld [vmem:[%s6425_s27 + $0x38] sm:$0x1] }
  0x2f   : > { %v331_v19 = vsel %vm6451_vm4, %v326_v8, %v330_v59  ;;  %v2120_v27 = vrot.slane %v2119_v12, 4  ;;  %v335_v29 = vrot.slane %v333_v14, 4  ;;  %v338_v31 = vrot.slane %v336_v18, 5  ;;  %6203 = vmatprep.subr.msk.bf16.mxu0 %vm743_vm0, %v6444_v26  ;;  %v5130_v12 = vld [vmem:[%s6425_s27 + $0x3c] sm:$0xf] }
  0x30   : > { %v4942_v25 = vcombine.low %v321_v11, %v331_v19  ;;  %v2129_v34 = vor.u32 %v2128_v20, %v2124_v9  ;;  %v344_v35 = vrot.slane %v342_v23, 5  ;;  %v346_v37 = vshrl.u32 %v215_v7, 16  ;;  %v6555_v20 = vld [vmem:[%s6425_s27 + $0x40] sm:$0xf] }
  0x31   : > { %v352_v36 = vshll.u32 %v244_v13, 16  ;;  %v2125_v38 = vsel %vm6451_vm4, %v2120_v27, %v2124_v9  ;;  %v339_v39 = vor.u32 %v338_v31, %v335_v29  ;;  %v2137_v42 = vshrl.u32 %v5127_v24, 16 }
  0x32   : > { %5638 = vmatprep.mubr.msk.bf16.mxu1 %vm694_vm3, %v4942_v25  ;;  %v2140_v43 = vshll.u32 %v5127_v24, 16  ;;  %v2130_v44 = vrot.slane %v2129_v34, 4  ;;  %v348_v45 = vrot.slane %v346_v37, 4  ;;  %v2146_v26 = vshll.u32 %v6530_v33, 16  ;;  %v6560_v34 = vld [vmem:[%s6425_s27 + $0x44] sm:$0x1] }
  0x33   : > { %v354_v47 = vrot.slane %v352_v36, 5  ;;  %v340_v48 = vrot.slane %v339_v39, 4  ;;  %v2139_v49 = vrot.slane %v2137_v42, 4  ;;  %v2150_v51 = vshrl.u32 %v6530_v33, 16  ;;  %v218_v42 = vld [vmem:[%s6425_s27 + $0x3c] sm:$0xf] }
  0x34   : > { %v2142_v50 = vrot.slane %v2140_v43, 5  ;;  %v2135_v53 = vsel %vm6451_vm4, %v2130_v44, %v2134_v21  ;;  %v349_v55 = vor.u32 %v348_v45, %v344_v35  ;;  %v2148_v56 = vrot.slane %v2146_v26, 5  ;;  %v219_v26 = vld [vmem:[%s6425_s27 + $0x40] sm:$0xf] }
  0x35   : > { %v2156_v57 = vshll.u32 %v6538_v40, 16  ;;  %v5169_v59 = vcombine.low %v2125_v38, %v2135_v53  ;;  %v345_v61 = vsel %vm6451_vm4, %v340_v48, %v344_v35  ;;  %v2152_v2 = vrot.slane %v2150_v51, 4 }
  0x36   : > { %v2143_v0 = vor.u32 %v2142_v50, %v2139_v49  ;;  %v350_v5 = vrot.slane %v349_v55, 4  ;;  %v357_v7 = vshrl.u32 %v216_v52, 16  ;;  %v360_v8 = vshll.u32 %v216_v52, 16 }
  0x37   : > { %v2158_v6 = vrot.slane %v2156_v57, 5  ;;  %5774 = vmatprep.mubr.msk.bf16.mxu0 %vm694_vm3, %v5169_v59  ;;  %v2153_v17 = vor.u32 %v2152_v2, %v2148_v56  ;;  %v366_v10 = vshll.u32 %v217_v58, 16  ;;  %v370_v11 = vshrl.u32 %v217_v58, 16  ;;  %v5133_v2 = vld [vmem:[%s6425_s27 + $0x48] sm:$0xf] }
  0x38   : > { %v2144_v9 = vrot.slane %v2143_v0, 4  ;;  %v355_v13 = vsel %vm6451_vm4, %v350_v5, %v354_v47  ;;  %v359_v14 = vrot.slane %v357_v7, 4  ;;  %v362_v18 = vrot.slane %v360_v8, 5  ;;  %v6578_v8 = vld [vmem:[%s6425_s27 + $0x4c] sm:$0xf] }
  0x39   : > { %v376_v19 = vshll.u32 %v245_v4, 16  ;;  %v4943_v21 = vcombine.low %v345_v61, %v355_v13  ;;  %v2154_v24 = vrot.slane %v2153_v17, 4  ;;  %v368_v25 = vrot.slane %v366_v10, 5  ;;  %v246_v61 = vld [vmem:[%s6425_s27 + $0x44] sm:$0x1] }
  0x3a   : > { %v2149_v23 = vsel %vm6451_vm4, %v2144_v9, %v2148_v56  ;;  %v363_v27 = vor.u32 %v362_v18, %v359_v14  ;;  %v372_v29 = vrot.slane %v370_v11, 4  ;;  %v2161_v35 = vshrl.u32 %v5130_v12, 16 }
  0x3b   : > { %v378_v31 = vrot.slane %v376_v19, 5  ;;  %5639 = vmatmul.mubr.msk.bf16.gmra.mrb[4].mxu1 %vm694_vm3, %v4943_v21  ;;  %v2159_v37 = vsel %vm6451_vm4, %v2154_v24, %v2158_v6  ;;  %v2164_v36 = vshll.u32 %v5130_v12, 16  ;;  %v2170_v38 = vshll.u32 %v6555_v20, 16 }
  0x3c   : > { %v2174_v39 = vshrl.u32 %v6555_v20, 16  ;;  %v5170_v43 = vcombine.low %v2149_v23, %v2159_v37  ;;  %v364_v44 = vrot.slane %v363_v27, 4  ;;  %v373_v45 = vor.u32 %v372_v29, %v368_v25  ;;  %v6586_v23 = vld [vmem:[%s6425_s27 + $0x50] sm:$0x1]  ;;  %v6590_v27 = vld [vmem:[%s6425_s27 + $0x48] sm:$0xf] }
  0x3d   : > { %v2163_v47 = vrot.slane %v2161_v35, 4  ;;  %v2166_v48 = vrot.slane %v2164_v36, 5  ;;  %v2172_v49 = vrot.slane %v2170_v38, 5  ;;  %v2180_v51 = vshll.u32 %v6560_v34, 16  ;;  %v6593_v36 = vld [vmem:[%s6425_s27 + $0x4c] sm:$0xf] }
  0x3e   : > { %v2176_v50 = vrot.slane %v2174_v39, 4  ;;  %5775 = vmatmul.mubr.msk.bf16.gmra.mrb[4].mxu0 %vm694_vm3, %v5170_v43  ;;  %v369_v52 = vsel %vm6451_vm4, %v364_v44, %v368_v25  ;;  %v374_v53 = vrot.slane %v373_v45, 4  ;;  %v381_v55 = vshrl.u32 %v218_v42, 16 }
  0x3f   : > { %v384_v56 = vshll.u32 %v218_v42, 16  ;;  %v2167_v57 = vor.u32 %v2166_v48, %v2163_v47  ;;  %v2182_v59 = vrot.slane %v2180_v51, 5  ;;  %v390_v0 = vshll.u32 %v219_v26, 16 }
  0x40   : > { %v2177_v58 = vor.u32 %v2176_v50, %v2172_v49  ;;  %v379_v4 = vsel %vm6451_vm4, %v374_v53, %v378_v31  ;;  %v383_v5 = vrot.slane %v381_v55, 4  ;;  %v394_v7 = vshrl.u32 %v219_v26, 16  ;;  %v247_v26 = vld [vmem:[%s6425_s27 + $0x50] sm:$0x1]  ;;  %v5136_v53 = vld [vmem:[%s6425_s27 + $0x54] sm:$0xf] }
  0x41   : > { %v386_v6 = vrot.slane %v384_v56, 5  ;;  %v4944_v9 = vcombine.low %v369_v52, %v379_v4  ;;  %v2168_v17 = vrot.slane %v2167_v57, 4  ;;  %v392_v11 = vrot.slane %v390_v0, 5  ;;  %v6609_v4 = vld [vmem:[%s6425_s27 + $0x58] sm:$0xf] }
  0x42   : > { %v2178_v10 = vrot.slane %v2177_v58, 4  ;;  %v396_v13 = vrot.slane %v394_v7, 4  ;;  %v400_v14 = vshll.u32 %v246_v61, 16  ;;  %v2185_v18 = vshrl.u32 %v5133_v2, 16 }
  0x43   : > { %v387_v12 = vor.u32 %v386_v6, %v383_v5  ;;  %5642 = vmatprep.mubr.msk.bf16.mxu1 %vm694_vm3, %v4944_v9  ;;  %v2173_v19 = vsel %vm6451_vm4, %v2168_v17, %v2172_v49  ;;  %v2188_v24 = vshll.u32 %v5133_v2, 16  ;;  %v2194_v25 = vshll.u32 %v6578_v8, 16 }
  0x44   : > { %v2183_v21 = vsel %vm6451_vm4, %v2178_v10, %v2182_v59  ;;  %v397_v35 = vor.u32 %v396_v13, %v392_v11  ;;  %v402_v37 = vrot.slane %v400_v14, 5  ;;  %v2187_v38 = vrot.slane %v2185_v18, 4 }
  0x45   : > { %v5171_v29 = vcombine.low %v2173_v19, %v2183_v21  ;;  %v388_v31 = vrot.slane %v387_v12, 4  ;;  %v2190_v39 = vrot.slane %v2188_v24, 5  ;;  %v2196_v42 = vrot.slane %v2194_v25, 5  ;;  %v6615_v12 = vld [vmem:[%s6425_s27 + $0x5c] sm:$0x1] }
  0x46   : > { %v2198_v43 = vshrl.u32 %v6578_v8, 16  ;;  %v398_v45 = vrot.slane %v397_v35, 4  ;;  %v2204_v47 = vshll.u32 %v6586_v23, 16  ;;  %v405_v48 = vshrl.u32 %v6590_v27, 16  ;;  %v6619_v24 = vld [vmem:[%s6425_s27 + $0x54] sm:$0xf] }
  0x47   : > { %5778 = vmatprep.mubr.msk.bf16.mxu0 %vm694_vm3, %v5171_v29  ;;  %v393_v44 = vsel %vm6451_vm4, %v388_v31, %v392_v11  ;;  %v2191_v49 = vor.u32 %v2190_v39, %v2187_v38  ;;  %v408_v51 = vshll.u32 %v6590_v27, 16  ;;  %v414_v52 = vshll.u32 %v6593_v36, 16 }
  0x48   : > { %v2200_v50 = vrot.slane %v2198_v43, 4  ;;  %v403_v55 = vsel %vm6451_vm4, %v398_v45, %v402_v37  ;;  %v2206_v56 = vrot.slane %v2204_v47, 5  ;;  %v407_v57 = vrot.slane %v405_v48, 4  ;;  %v6625_v37 = vld [vmem:[%s6425_s27 + $0x58] sm:$0xf] }
  0x49   : > { %v418_v58 = vshrl.u32 %v6593_v36, 16  ;;  %v4945_v59 = vcombine.low %v393_v44, %v403_v55  ;;  %v2192_v61 = vrot.slane %v2191_v49, 4  ;;  %v410_v2 = vrot.slane %v408_v51, 5 }
  0x4a   : > { %v2201_v0 = vor.u32 %v2200_v50, %v2196_v42  ;;  %v416_v5 = vrot.slane %v414_v52, 5  ;;  %v424_v7 = vshll.u32 %v247_v26, 16  ;;  %v2209_v9 = vshrl.u32 %v5136_v53, 16  ;;  %v248_v26 = vld [vmem:[%s6425_s27 + $0x5c] sm:$0x1] }
  0x4b   : > { %v420_v6 = vrot.slane %v418_v58, 4  ;;  %5643 = vmatmul.mubr.msk.bf16.gmra.mrb[8].mxu1 %vm694_vm3, %v4945_v59  ;;  %v2197_v17 = vsel %vm6451_vm4, %v2192_v61, %v2196_v42  ;;  %v411_v11 = vor.u32 %v410_v2, %v407_v57  ;;  %v2212_v13 = vshll.u32 %v5136_v53, 16  ;;  %v5139_v53 = vld [vmem:[%s6425_s27 + $0x60] sm:$0xf]  ;;  %v6639_v59 = vld [vmem:[%s6425_s27 + $0x64] sm:$0xf] }
  0x4c   : > { %v2202_v10 = vrot.slane %v2201_v0, 4  ;;  %v426_v18 = vrot.slane %v424_v7, 5  ;;  %v2211_v19 = vrot.slane %v2209_v9, 4  ;;  %v2218_v21 = vshll.u32 %v6609_v4, 16  ;;  %v6646_v9 = vld [vmem:[%s6425_s27 + $0x68] sm:$0x1] }
  0x4d   : > { %v421_v14 = vor.u32 %v420_v6, %v416_v5  ;;  %v412_v29 = vrot.slane %v411_v11, 4  ;;  %v2214_v31 = vrot.slane %v2212_v13, 5  ;;  %v2222_v35 = vshrl.u32 %v6609_v4, 16 }
  0x4e   : > { %v2207_v25 = vsel %vm6451_vm4, %v2202_v10, %v2206_v56  ;;  %v2220_v42 = vrot.slane %v2218_v21, 5  ;;  %v2228_v43 = vshll.u32 %v6615_v12, 16  ;;  %v429_v48 = vshrl.u32 %v6619_v24, 16 }
  0x4f   : > { %v5172_v38 = vcombine.low %v2197_v17, %v2207_v25  ;;  %v422_v39 = vrot.slane %v421_v14, 4  ;;  %v417_v44 = vsel %vm6451_vm4, %v412_v29, %v416_v5  ;;  %v2215_v45 = vor.u32 %v2214_v31, %v2211_v19  ;;  %v6650_v19 = vld [vmem:[%s6425_s27 + $0x60] sm:$0xf] }
  0x50   : > { %v2224_v47 = vrot.slane %v2222_v35, 4  ;;  %v2230_v50 = vrot.slane %v2228_v43, 5  ;;  %v432_v51 = vshll.u32 %v6619_v24, 16  ;;  %v438_v52 = vshll.u32 %v6625_v37, 16  ;;  %v6656_v35 = vld [vmem:[%s6425_s27 + $0x64] sm:$0xf] }
  0x51   : > { %5779 = vmatmul.mubr.msk.bf16.gmra.mrb[8].mxu0 %vm694_vm3, %v5172_v38  ;;  %v427_v49 = vsel %vm6451_vm4, %v422_v39, %v426_v18  ;;  %v2216_v56 = vrot.slane %v2215_v45, 4  ;;  %v431_v58 = vrot.slane %v429_v48, 4  ;;  %v442_v2 = vshrl.u32 %v6625_v37, 16 }
  0x52   : > { %v4946_v55 = vcombine.low %v417_v44, %v427_v49  ;;  %v2225_v57 = vor.u32 %v2224_v47, %v2220_v42  ;;  %v434_v61 = vrot.slane %v432_v51, 5  ;;  %v440_v0 = vrot.slane %v438_v52, 5 }
  0x53   : > { %v448_v5 = vshll.u32 %v248_v26, 16  ;;  %v2221_v6 = vsel %vm6451_vm4, %v2216_v56, %v2220_v42  ;;  %v2233_v17 = vshrl.u32 %v5139_v53, 16  ;;  %v2236_v10 = vshll.u32 %v5139_v53, 16 }
  0x54   : > { %5646 = vmatprep.mubr.msk.bf16.mxu1 %vm694_vm3, %v4946_v55  ;;  %v2226_v7 = vrot.slane %v2225_v57, 4  ;;  %v435_v11 = vor.u32 %v434_v61, %v431_v58  ;;  %v444_v13 = vrot.slane %v442_v2, 4  ;;  %v2242_v18 = vshll.u32 %v6639_v59, 16  ;;  %v5199_v58 = vld [vmem:[%s6425_s27 + $0xc] sm:$0xe] }
  0x55   : > { %v450_v14 = vrot.slane %v448_v5, 5  ;;  %v2235_v25 = vrot.slane %v2233_v17, 4  ;;  %v2238_v29 = vrot.slane %v2236_v10, 5  ;;  %v2246_v31 = vshrl.u32 %v6639_v59, 16 }
  0x56   : > { %v2231_v21 = vsel %vm6451_vm4, %v2226_v7, %v2230_v50  ;;  %v436_v39 = vrot.slane %v435_v11, 4  ;;  %v445_v42 = vor.u32 %v444_v13, %v440_v0  ;;  %v2244_v43 = vrot.slane %v2242_v18, 5  ;;  %v249_v50 = vld [vmem:[%s6425_s27 + $0x68] sm:$0x1] }
  0x57   : > { %v5173_v38 = vcombine.low %v2221_v6, %v2231_v21  ;;  %v2239_v44 = vor.u32 %v2238_v29, %v2235_v25  ;;  %v2248_v45 = vrot.slane %v2246_v31, 4  ;;  %v2252_v47 = vshll.u32 %v6646_v9, 16  ;;  %v6684_v29 = vld [vmem:[%s6425_s27 + $0x70] sm:$0xf] }
  0x58   : > { %v453_v26 = vshrl.u32 %v6650_v19, 16  ;;  %v441_v48 = vsel %vm6451_vm4, %v436_v39, %v440_v0  ;;  %v446_v49 = vrot.slane %v445_v42, 4  ;;  %v456_v51 = vshll.u32 %v6650_v19, 16  ;;  %v6671_v0 = vld [vmem:[%s6425_s27 + $0x6c] sm:$0xf] }
  0x59   : > { %5782 = vmatprep.mubr.msk.bf16.mxu0 %vm694_vm3, %v5173_v38  ;;  %v462_v52 = vshll.u32 %v6656_v35, 16  ;;  %v2240_v53 = vrot.slane %v2239_v44, 4  ;;  %v2249_v55 = vor.u32 %v2248_v45, %v2244_v43  ;;  %v2254_v56 = vrot.slane %v2252_v47, 5 }
  0x5a   : > { %v455_v57 = vrot.slane %v453_v26, 4  ;;  %v451_v61 = vsel %vm6451_vm4, %v446_v49, %v450_v14  ;;  %v458_v2 = vrot.slane %v456_v51, 5  ;;  %v466_v6 = vshrl.u32 %v6656_v35, 16  ;;  %v250_v26 = vld [vmem:[%s6425_s27 + $0x74] sm:$0x1] }
  0x5b   : > { %v464_v5 = vrot.slane %v462_v52, 5  ;;  %v4947_v7 = vcombine.low %v441_v48, %v451_v61  ;;  %v2245_v17 = vsel %vm6451_vm4, %v2240_v53, %v2244_v43  ;;  %v2250_v10 = vrot.slane %v2249_v55, 4  ;;  %v5200_v48 = vld [vmem:[%s6425_s27 + $0x18] sm:$0xe] }
  0x5c   : > { %v472_v11 = vshll.u32 %v249_v50, 16  ;;  %v459_v14 = vor.u32 %v458_v2, %v455_v57  ;;  %v468_v18 = vrot.slane %v466_v6, 4  ;;  %v5215_v21 = vrot.slane %v5199_v58, 9  ;;  %v6703_v53 = vld [vmem:[%s6425_s27 + $0x78] sm:$0xf] }
  0x5d   : > { %v2810_v25 = vrot.slane %v2808_v62, 4  ;;  %5647 = vmatmul.mubr.msk.bf16.gmra.mrb[12].mxu1 %vm694_vm3, %v4947_v7  ;;  %v2255_v31 = vsel %vm6451_vm4, %v2250_v10, %v2254_v56  ;;  %v477_v39 = vshrl.u32 %v6671_v0, 16  ;;  %v480_v42 = vshll.u32 %v6671_v0, 16  ;;  %v251_v57 = vld [vmem:[%s6425_s27 + $0x80] sm:$0x1] }
  0x5e   : > { %v474_v38 = vrot.slane %v472_v11, 5  ;;  %v5174_v43 = vcombine.low %v2245_v17, %v2255_v31  ;;  %v460_v44 = vrot.slane %v459_v14, 4  ;;  %v469_v45 = vor.u32 %v468_v18, %v464_v5  ;;  %v5201_v10 = vld [vmem:[%s6425_s27 + $0x24] sm:$0xe] }
  0x5f   : > { %v2809_v47 = vsel %vm6677_vm7, %v5215_v21, %v2808_v62  ;;  %v2812_v49 = vsel %vm6677_vm7, %v2810_v25, %v2811_v63  ;;  %v479_v50 = vrot.slane %v477_v39, 4  ;;  %v482_v51 = vrot.slane %v480_v42, 5  ;;  %v6729_v39 = vld [vmem:[%s6425_s27 + $0x84] sm:$0xf] }
  0x60   : > { %v486_v52 = vshll.u32 %v6684_v29, 16  ;;  %5783 = vmatmul.mubr.msk.bf16.gmra.mrb[12].mxu0 %vm694_vm3, %v5174_v43  ;;  %v465_v15 = vsel %vm6451_vm4, %v460_v44, %v464_v5  ;;  %v470_v62 = vrot.slane %v469_v45, 4  ;;  %v5232_v55 = vcombine.low %v2809_v47, %v2812_v49  ;;  %v6737_v43 = vld [vmem:[%s6425_s27 + $0x88] sm:$0xf] }
  0x61   : > { %v490_v56 = vshrl.u32 %v6684_v29, 16  ;;  %v483_v63 = vor.u32 %v482_v51, %v479_v50  ;;  %v496_v61 = vshll.u32 %v250_v26, 16  ;;  %v5216_v2 = vrot.slane %v5200_v48, 9 }
  0x62   : > { %v488_v58 = vrot.slane %v486_v52, 5  ;;  %v475_v6 = vsel %vm6451_vm4, %v470_v62, %v474_v38  ;;  %5804 = vmatprep.mubr.msk.bf16.mxu0 %vm694_vm3, %v5232_v55  ;;  %v2819_v5 = vsel %vm6677_vm7, %v6494_v30, %v2818_v28  ;;  %v501_v17 = vshrl.u32 %v6703_v53, 16  ;;  %v252_v52 = vld [vmem:[%s6425_s27 + $0x8c] sm:$0x1] }
  0x63   : > { %v492_v7 = vrot.slane %v490_v56, 4  ;;  %v4948_v11 = vcombine.low %v465_v15, %v475_v6  ;;  %v484_v14 = vrot.slane %v483_v63, 4  ;;  %v498_v18 = vrot.slane %v496_v61, 5 }
  0x64   : > { %v2816_v21 = vsel %vm6677_vm7, %v5216_v2, %v2815_v22  ;;  %v503_v38 = vrot.slane %v501_v17, 4  ;;  %v504_v1 = vshll.u32 %v6703_v53, 16  ;;  %v510_v30 = vshll.u32 %v6710_v16, 16  ;;  %v6742_v22 = vld [vmem:[%s8217_s0 + $0xe] sm:$0x3] }
  0x65   : > { %v493_v25 = vor.u32 %v492_v7, %v488_v58  ;;  %v5233_v31 = vcombine.low %v2816_v21, %v2819_v5  ;;  %5650 = vmatprep.mubr.msk.bf16.mxu1 %vm694_vm3, %v4948_v11  ;;  %v489_v28 = vsel %vm6451_vm4, %v484_v14, %v488_v58  ;;  %v514_v60 = vshrl.u32 %v6710_v16, 16  ;;  %v6761_v5 = vld [vmem:[%s6425_s27 + $0x90] sm:$0xf] }
  0x66   : > { %v520_v42 = vshll.u32 %v251_v57, 16  ;;  %v506_v45 = vrot.slane %v504_v1, 5  ;;  %v5217_v47 = vrot.slane %v5201_v10, 9  ;;  %v2822_v26 = vrot.slane %v6501_v46, 5  ;;  %v5202_v57 = vld [vmem:[%s6425_s27 + $0x30] sm:$0xe] }
  0x67   : > { %v494_v44 = vrot.slane %v493_v25, 4  ;;  %v512_v48 = vrot.slane %v510_v30, 5  ;;  %v516_v49 = vrot.slane %v514_v60, 4  ;;  %v2825_v51 = vrot.slane %v6510_v54, 5  ;;  %v6773_v30 = vld [vmem:[%s6425_s27 + $0x94] sm:$0xf] }
  0x68   : > { %v522_v50 = vrot.slane %v520_v42, 5  ;;  %5805 = vmatmul.mubr.msk.bf16.vlgmr.msra.gmra.mrb[0].mxu0 %vm694_vm3, %v5233_v31  ;;  %v507_v62 = vor.u32 %v506_v45, %v503_v38  ;;  %v2823_v55 = vsel %vm6677_vm7, %v5217_v47, %v2822_v26  ;;  %v2824_v56 = vrot.slane %v2822_v26, 4  ;;  %v253_v60 = vld [vmem:[%s6425_s27 + $0x98] sm:$0x1]  ;;  %v5203_v26 = vld [vmem:[%s6425_s27 + $0x3c] sm:$0xe] }
  0x69   : > { %v499_v15 = vsel %vm6451_vm4, %v494_v44, %v498_v18  ;;  %5837 = vmatpush3.bf16.msra.mxu0 %v6461_v41  ;;  %v517_v46 = vor.u32 %v516_v49, %v512_v48  ;;  %v525_v58 = vshrl.u32 %v6729_v39, 16  ;;  %v528_v54 = vshll.u32 %v6729_v39, 16 }
  0x6a   : > { %v4949_v63 = vcombine.low %v489_v28, %v499_v15  ;;  %v508_v61 = vrot.slane %v507_v62, 4  ;;  %v2826_v2 = vsel %vm6677_vm7, %v2824_v56, %v2825_v51  ;;  %v534_v6 = vshll.u32 %v6737_v43, 16  ;;  %6204 = vmatprep.subr.msk.bf16.mxu0 %vm743_vm0, %v6742_v22 }
  0x6b   : > { %v538_v7 = vshrl.u32 %v6737_v43, 16  ;;  %v518_v41 = vrot.slane %v517_v46, 4  ;;  %v5234_v17 = vcombine.low %v2823_v55, %v2826_v2  ;;  %v527_v10 = vrot.slane %v525_v58, 4  ;;  %v6793_v46 = vld [vmem:[%s6425_s27 + $0xa0] sm:$0xf] }
  0x6c   : > { %5651 = vmatmul.mubr.msk.bf16.gmra.mrb[16].mxu1 %vm694_vm3, %v4949_v63  ;;  %v530_v11 = vrot.slane %v528_v54, 5  ;;  %v513_v14 = vsel %vm6451_vm4, %v508_v61, %v512_v48  ;;  %v536_v18 = vrot.slane %v534_v6, 5  ;;  %v544_v25 = vshll.u32 %v252_v52, 16  ;;  %v6782_v52 = vld [vmem:[%s6425_s27 + $0x9c] sm:$0xf] }
  0x6d   : > { %v540_v21 = vrot.slane %v538_v7, 4  ;;  %v523_v31 = vsel %vm6451_vm4, %v518_v41, %v522_v50  ;;  %5808 = vmatprep.mubr.msk.bf16.mxu0 %vm694_vm3, %v5234_v17  ;;  %v5218_v1 = vrot.slane %v5202_v57, 9  ;;  %v2829_v28 = vrot.slane %v6530_v33, 5 }
  0x6e   : > { %v531_v38 = vor.u32 %v530_v11, %v527_v10  ;;  %v4950_v42 = vcombine.low %v513_v14, %v523_v31  ;;  %v546_v45 = vrot.slane %v544_v25, 5  ;;  %v2832_v47 = vrot.slane %v6538_v40, 5  ;;  %v254_v10 = vld [vmem:[%s6425_s27 + $0xa4] sm:$0x1]  ;;  %v5204_v11 = vld [vmem:[%s6425_s27 + $0x48] sm:$0xe] }
  0x6f   : > { %v541_v44 = vor.u32 %v540_v21, %v536_v18  ;;  %v2830_v49 = vsel %vm6677_vm7, %v5218_v1, %v2829_v28  ;;  %v2831_v50 = vrot.slane %v2829_v28, 4  ;;  %v549_v51 = vshrl.u32 %v6761_v5, 16 }
  0x70   : > { %v532_v48 = vrot.slane %v531_v38, 4  ;;  %5654 = vmatprep.mubr.msk.bf16.mxu1 %vm694_vm3, %v4950_v42  ;;  %v552_v15 = vshll.u32 %v6761_v5, 16  ;;  %v558_v62 = vshll.u32 %v6773_v30, 16  ;;  %v562_v40 = vshrl.u32 %v6773_v30, 16 }
  0x71   : > { %v542_v33 = vrot.slane %v541_v44, 4  ;;  %v2833_v56 = vsel %vm6677_vm7, %v2831_v50, %v2832_v47  ;;  %v551_v57 = vrot.slane %v549_v51, 4  ;;  %v568_v63 = vshll.u32 %v253_v60, 16 }
  0x72   : > { %v537_v55 = vsel %vm6451_vm4, %v532_v48, %v536_v18  ;;  %v5235_v54 = vcombine.low %v2830_v49, %v2833_v56  ;;  %v554_v61 = vrot.slane %v552_v15, 5  ;;  %v560_v2 = vrot.slane %v558_v62, 5  ;;  %v6819_v56 = vld [vmem:[%s6425_s27 + $0xac] sm:$0xf] }
  0x73   : > { %v547_v58 = vsel %vm6451_vm4, %v542_v33, %v546_v45  ;;  %v564_v7 = vrot.slane %v562_v40, 4  ;;  %v570_v41 = vrot.slane %v568_v63, 5  ;;  %v5219_v17 = vrot.slane %v5203_v26, 9  ;;  %v6814_v33 = vld [vmem:[%s6425_s27 + $0xa8] sm:$0xf] }
  0x74   : > { %v4951_v6 = vcombine.low %v537_v55, %v547_v58  ;;  %5809 = vmatmul.mubr.msk.bf16.gmra.mrb[4].mxu0 %vm694_vm3, %v5235_v54  ;;  %v555_v14 = vor.u32 %v554_v61, %v551_v57  ;;  %v2836_v18 = vrot.slane %v6555_v20, 5  ;;  %v2839_v21 = vrot.slane %v6560_v34, 5  ;;  %v255_v61 = vld [vmem:[%s6425_s27 + $0xb0] sm:$0x1] }
  0x75   : > { %v573_v25 = vshrl.u32 %v6782_v52, 16  ;;  %v565_v31 = vor.u32 %v564_v7, %v560_v2  ;;  %v576_v38 = vshll.u32 %v6782_v52, 16  ;;  %v582_v1 = vshll.u32 %v6793_v46, 16 }
  0x76   : > { %5655 = vmatmul.mubr.msk.bf16.gmra.mrb[20].mxu1 %vm694_vm3, %v4951_v6  ;;  %v586_v28 = vshrl.u32 %v6793_v46, 16  ;;  %v556_v60 = vrot.slane %v555_v14, 4  ;;  %v2837_v42 = vsel %vm6677_vm7, %v5219_v17, %v2836_v18  ;;  %v2838_v20 = vrot.slane %v2836_v18, 4  ;;  %v6834_v14 = vld [vmem:[%s6425_s27 + $0xb4] sm:$0xf] }
  0x77   : > { %v575_v44 = vrot.slane %v573_v25, 4  ;;  %v566_v34 = vrot.slane %v565_v31, 4  ;;  %v578_v45 = vrot.slane %v576_v38, 5  ;;  %v584_v47 = vrot.slane %v582_v1, 5 }
  0x78   : > { %v588_v26 = vrot.slane %v586_v28, 4  ;;  %v561_v48 = vsel %vm6451_vm4, %v556_v60, %v560_v2  ;;  %v2840_v49 = vsel %vm6677_vm7, %v2838_v20, %v2839_v21  ;;  %v592_v50 = vshll.u32 %v254_v10, 16  ;;  %v5205_v2 = vld [vmem:[%s6425_s27 + $0x54] sm:$0xe] }
  0x79   : > { %v5220_v51 = vrot.slane %v5204_v11, 9  ;;  %v571_v15 = vsel %vm6451_vm4, %v566_v34, %v570_v41  ;;  %v5236_v62 = vcombine.low %v2837_v42, %v2840_v49  ;;  %v579_v40 = vor.u32 %v578_v45, %v575_v44  ;;  %v6843_v42 = vld [vmem:[%s6425_s27 + $0xb8] sm:$0xf]  ;;  %v256_v49 = vld [vmem:[%s6425_s27 + $0xbc] sm:$0x1] }
  0x7a   : > { %v589_v55 = vor.u32 %v588_v26, %v584_v47  ;;  %v4952_v57 = vcombine.low %v561_v48, %v571_v15  ;;  %v594_v63 = vrot.slane %v592_v50, 5  ;;  %v2843_v58 = vrot.slane %v6578_v8, 5 }
  0x7b   : > { %v2846_v54 = vrot.slane %v6586_v23, 5  ;;  %5812 = vmatprep.mubr.msk.bf16.mxu0 %vm694_vm3, %v5236_v62  ;;  %v580_v6 = vrot.slane %v579_v40, 4  ;;  %v597_v41 = vshrl.u32 %v6814_v33, 16  ;;  %v600_v17 = vshll.u32 %v6814_v33, 16 }
  0x7c   : > { %v590_v7 = vrot.slane %v589_v55, 4  ;;  %5658 = vmatprep.mubr.msk.bf16.mxu1 %vm694_vm3, %v4952_v57  ;;  %v2844_v10 = vsel %vm6677_vm7, %v5220_v51, %v2843_v58  ;;  %v2845_v11 = vrot.slane %v2843_v58, 4  ;;  %v606_v8 = vshll.u32 %v6819_v56, 16  ;;  %v5206_v55 = vld [vmem:[%s6425_s27 + $0x60] sm:$0xe] }
  0x7d   : > { %v610_v23 = vshrl.u32 %v6819_v56, 16  ;;  %v585_v18 = vsel %vm6451_vm4, %v580_v6, %v584_v47  ;;  %v599_v25 = vrot.slane %v597_v41, 4  ;;  %v602_v31 = vrot.slane %v600_v17, 5  ;;  %v5207_v6 = vld [vmem:[%s6425_s27 + $0x6c] sm:$0xe] }
  0x7e   : > { %v595_v21 = vsel %vm6451_vm4, %v590_v7, %v594_v63  ;;  %v2847_v1 = vsel %vm6677_vm7, %v2845_v11, %v2846_v54  ;;  %v608_v28 = vrot.slane %v606_v8, 5  ;;  %v616_v34 = vshll.u32 %v255_v61, 16  ;;  %v5143_v11 = vld [vmem:[%s6425_s27 + $0x70] sm:$0xf]  ;;  %v5144_v8 = vld [vmem:[%s6425_s27 + $0x74] sm:$0x1] }
  0x7f   : > { %v4953_v38 = vcombine.low %v585_v18, %v595_v21  ;;  %v612_v60 = vrot.slane %v610_v23, 4  ;;  %v5237_v20 = vcombine.low %v2844_v10, %v2847_v1  ;;  %v603_v44 = vor.u32 %v602_v31, %v599_v25 }
  0x80   : > { %v5221_v45 = vrot.slane %v5205_v2, 9  ;;  %v2850_v26 = vrot.slane %v6609_v4, 5  ;;  %v2853_v48 = vrot.slane %v6615_v12, 5  ;;  %v621_v50 = vshrl.u32 %v6834_v14, 16 }
  0x81   : > { %5659 = vmatmul.mubr.msk.bf16.gmra.mrb[24].mxu1 %vm694_vm3, %v4953_v38  ;;  %v613_v47 = vor.u32 %v612_v60, %v608_v28  ;;  %5813 = vmatmul.mubr.msk.bf16.gmra.mrb[8].mxu0 %vm694_vm3, %v5237_v20  ;;  %v604_v51 = vrot.slane %v603_v44, 4  ;;  %v618_v15 = vrot.slane %v616_v34, 5  ;;  %v624_v62 = vshll.u32 %v6834_v14, 16 }
  0x82   : > { %v630_v40 = vshll.u32 %v6843_v42, 16  ;;  %v2851_v4 = vsel %vm6677_vm7, %v5221_v45, %v2850_v26  ;;  %v2852_v12 = vrot.slane %v2850_v26, 4  ;;  %v623_v63 = vrot.slane %v621_v50, 4 }
  0x83   : > { %v614_v57 = vrot.slane %v613_v47, 4  ;;  %v609_v58 = vsel %vm6451_vm4, %v604_v51, %v608_v28  ;;  %v626_v54 = vrot.slane %v624_v62, 5  ;;  %v634_v2 = vshrl.u32 %v6843_v42, 16  ;;  %v5208_v47 = vld [vmem:[%s6425_s27 + $0x78] sm:$0xe] }
  0x84   : > { %v632_v61 = vrot.slane %v630_v40, 5  ;;  %v2854_v41 = vsel %vm6677_vm7, %v2852_v12, %v2853_v48  ;;  %v640_v17 = vshll.u32 %v256_v49, 16  ;;  %v5222_v10 = vrot.slane %v5206_v55, 9  ;;  %v6279_v51 = vld [vmem:[%s6425_s27] sm:$0xf] }
  0x85   : > { %v619_v7 = vsel %vm6451_vm4, %v614_v57, %v618_v15  ;;  %v5238_v18 = vcombine.low %v2851_v4, %v2854_v41  ;;  %v627_v21 = vor.u32 %v626_v54, %v623_v63  ;;  %v636_v25 = vrot.slane %v634_v2, 4  ;;  %v6881_v15 = vld [vmem:[%s6425_s27 + $0x4] sm:$0xf]  ;;  %v6885_v40 = vld [vmem:[%s6425_s27 + $0x7c] sm:$0xf] }
  0x86   : > { %v4954_v23 = vcombine.low %v609_v58, %v619_v7  ;;  %v642_v31 = vrot.slane %v640_v17, 5  ;;  %v2857_v38 = vrot.slane %v6639_v59, 5  ;;  %v2860_v1 = vrot.slane %v6646_v9, 5  ;;  %v6888_v55 = vld [vmem:[%s6425_s27 + $0x80] sm:$0x1] }
  0x87   : > { %v5223_v28 = vrot.slane %v5207_v6, 9  ;;  %5816 = vmatprep.mubr.msk.bf16.mxu0 %vm694_vm3, %v5238_v18  ;;  %v628_v60 = vrot.slane %v627_v21, 4  ;;  %v637_v20 = vor.u32 %v636_v25, %v632_v61  ;;  %v2864_v44 = vrot.slane %v5143_v11, 5  ;;  %v5149_v57 = vld [vmem:[%s6425_s27 + $0x88] sm:$0xf] }
  0x88   : > { %5662 = vmatprep.mubr.msk.bf16.mxu1 %vm694_vm3, %v4954_v23  ;;  %v2867_v34 = vrot.slane %v5144_v8, 5  ;;  %v2858_v45 = vsel %vm6677_vm7, %v5222_v10, %v2857_v38  ;;  %v2859_v59 = vrot.slane %v2857_v38, 4  ;;  %v4972_v62 = vcombine.low %v6279_v51, %v6881_v15  ;;  %v5150_v54 = vld [vmem:[%s6425_s27 + $0x8c] sm:$0x1]  ;;  %v5152_v17 = vld [vmem:[%s6425_s27 + $0x94] sm:$0xf] }
  0x89   : > { %v633_v9 = vsel %vm6451_vm4, %v628_v60, %v632_v61  ;;  %v638_v26 = vrot.slane %v637_v20, 4  ;;  %v2865_v48 = vsel %vm6677_vm7, %v5223_v28, %v2864_v44  ;;  %v2866_v49 = vrot.slane %v2864_v44, 4  ;;  %v5209_v61 = vld [vmem:[%s6425_s27 + $0x84] sm:$0xe]  ;;  %v5210_v23 = vld [vmem:[%s6425_s27 + $0x90] sm:$0xe] }
  0x8a   : > { %v2861_v50 = vsel %vm6677_vm7, %v2859_v59, %v2860_v1  ;;  %v5224_v58 = vrot.slane %v5208_v47, 9  ;;  %v2871_v7 = vrot.slane %v6885_v40, 5  ;;  %v2874_v41 = vrot.slane %v6888_v55, 5  ;;  %v5153_v25 = vld [vmem:[%s6425_s27 + $0x98] sm:$0x1] }
  0x8b   : > { %v643_v4 = vsel %vm6451_vm4, %v638_v26, %v642_v31  ;;  %v5239_v12 = vcombine.low %v2858_v45, %v2861_v50  ;;  %v2868_v63 = vsel %vm6677_vm7, %v2866_v49, %v2867_v34  ;;  %v5225_v10 = vrot.slane %v5209_v61, 9  ;;  %v5155_v31 = vld [vmem:[%s6425_s27 + $0xa0] sm:$0xf]  ;;  %v5156_v60 = vld [vmem:[%s6425_s27 + $0xa4] sm:$0x1] }
  0x8c   : > { %v4955_v2 = vcombine.low %v633_v9, %v643_v4  ;;  %v5240_v6 = vcombine.low %v2865_v48, %v2868_v63  ;;  %v2878_v11 = vrot.slane %v5149_v57, 5  ;;  %v2881_v8 = vrot.slane %v5150_v54, 5  ;;  %v5211_v20 = vld [vmem:[%s6425_s27 + $0x9c] sm:$0xe]  ;;  %v6281_v44 = vld [vmem:[%s6425_s27 + $0xc] sm:$0xf] }
  0x8d   : > { %5817 = vmatmul.mubr.msk.bf16.gmra.mrb[12].mxu0 %vm694_vm3, %v5239_v12  ;;  %v2872_v18 = vsel %vm6677_vm7, %v5224_v58, %v2871_v7  ;;  %v2873_v21 = vrot.slane %v2871_v7, 4  ;;  %v2885_v28 = vrot.slane %v5152_v17, 5  ;;  %v6915_v34 = vld [vmem:[%s6425_s27 + $0x10] sm:$0xf]  ;;  %v6283_v47 = vld [vmem:[%s6425_s27 + $0x18] sm:$0xf] }
  0x8e   : > { %5663 = vmatmul.mubr.msk.bf16.gmra.mrb[28].mxu1 %vm694_vm3, %v4955_v2  ;;  %5820 = vmatprep.mubr.msk.bf16.mxu0 %vm694_vm3, %v5240_v6  ;;  %v2879_v38 = vsel %vm6677_vm7, %v5225_v10, %v2878_v11  ;;  %v2880_v1 = vrot.slane %v2878_v11, 4  ;;  %v4973_v45 = vcombine.low %v6281_v44, %v6915_v34  ;;  %v6922_v9 = vld [vmem:[%s6425_s27 + $0x1c] sm:$0xf]  ;;  %v5226_v48 = vrot.slane %v5210_v23, 9  ;;  %v5158_v57 = vld [vmem:[%s6425_s27 + $0xac] sm:$0xf] }
  0x8f   : > { %5668 = vmatprep.mubr.msk.bf16.mxu1 %vm694_vm3, %v4972_v62  ;;  %v2875_v59 = vsel %vm6677_vm7, %v2873_v21, %v2874_v41  ;;  %v4974_v26 = vcombine.low %v6283_v47, %v6922_v9  ;;  %v2887_v51 = vrot.slane %v2885_v28, 4  ;;  %v2888_v62 = vrot.slane %v5153_v25, 5  ;;  %v6285_v54 = vld [vmem:[%s8217_s0 + $0x4] sm:$0x3]  ;;  %v5161_v2 = vld [vmem:[%s6425_s27 + $0xb8] sm:$0xf] }
  0x90   : > { %v5241_v49 = vcombine.low %v2872_v18, %v2875_v59  ;;  %v2882_v50 = vsel %vm6677_vm7, %v2880_v1, %v2881_v8  ;;  %v5227_v12 = vrot.slane %v5211_v20, 9  ;;  %v2892_v63 = vrot.slane %v5155_v31, 5  ;;  %v6937_v7 = vld [vmem:[%s8217_s0 + $0x6] sm:$0x3]  ;;  %v5159_v10 = vld [vmem:[%s6425_s27 + $0xb0] sm:$0x1] }
  0x91   : > { %v5242_v4 = vcombine.low %v2879_v38, %v2882_v50  ;;  %v2895_v58 = vrot.slane %v5156_v60, 5  ;;  %v1462_v61 = vsel %vm743_vm0, %v6285_v54, 0  ;;  %v2886_v41 = vsel %vm6677_vm7, %v5226_v48, %v2885_v28  ;;  %v5212_v11 = vld [vmem:[%s6425_s27 + $0xa8] sm:$0xe]  ;;  %v5162_v25 = vld [vmem:[%s6425_s27 + $0xbc] sm:$0x1] }
  0x92   : > { %v2894_v6 = vrot.slane %v2892_v63, 4  ;;  %v2889_v17 = vsel %vm6677_vm7, %v2887_v51, %v2888_v62  ;;  %v2899_v8 = vrot.slane %v5158_v57, 5  ;;  %v2893_v23 = vsel %vm6677_vm7, %v5227_v12, %v2892_v63  ;;  %v5213_v31 = vld [vmem:[%s6425_s27 + $0xb4] sm:$0xe]  ;;  %v6286_v38 = vld [vmem:[%s6425_s27 + $0x24] sm:$0xf] }
  0x93   : > { %v2906_v21 = vrot.slane %v5161_v2, 5  ;;  %v6958_v1 = vld [vmem:[%s6425_s27 + $0x28] sm:$0xf]  ;;  %v5243_v60 = vcombine.low %v2886_v41, %v2889_v17  ;;  %v5228_v44 = vrot.slane %v5212_v11, 9  ;;  %v2902_v59 = vrot.slane %v5159_v10, 5 }
  0x94   : > { %v2896_v18 = vsel %vm6677_vm7, %v2894_v6, %v2895_v58  ;;  %v4975_v28 = vcombine.low %v6286_v38, %v6958_v1  ;;  %v6288_v47 = vld [vmem:[%s6425_s27 + $0x30] sm:$0xf]  ;;  %v2909_v51 = vrot.slane %v5162_v25, 5  ;;  %v5164_v62 = vld [vmem:[%s6425_s27 + $0xc4] sm:$0xf]  ;;  %v2294_v25 = vshrl.u32 %v6885_v40, 16 }
  0x95   : > { %5821 = vmatmul.mubr.msk.bf16.gmra.mrb[16].mxu0 %vm694_vm3, %v5241_v49  ;;  %v5244_v20 = vcombine.low %v2893_v23, %v2896_v18  ;;  %v5229_v49 = vrot.slane %v5213_v31, 9  ;;  %v2908_v50 = vrot.slane %v2906_v21, 4  ;;  %v2900_v57 = vsel %vm6677_vm7, %v5228_v44, %v2899_v8  ;;  %v5214_v12 = vld [vmem:[%s6425_s27 + $0xc0] sm:$0xe]  ;;  %v6290_v41 = vld [vmem:[%s6425_s27 + $0x3c] sm:$0xf] }
  0x96   : > { %5669 = vmatmul.mubr.msk.bf16.vlgmr.msra.gmra.mrb[0].mxu1 %vm694_vm3, %v4973_v45  ;;  %5824 = vmatprep.mubr.msk.bf16.mxu0 %vm694_vm3, %v5242_v4  ;;  %v2901_v45 = vrot.slane %v2899_v8, 4  ;;  %v2913_v63 = vrot.slane %v5164_v62, 5  ;;  %v5230_v6 = vrot.slane %v5214_v12, 9  ;;  %v6983_v17 = vld [vmem:[%s6425_s27 + $0x40] sm:$0xf]  ;;  %v4978_v18 = vcombine.low %v6590_v27, %v6593_v36  ;;  %v6242_v62 = vld [vmem:[%s6425_s27 + $0x24] sm:$0xff]  }
  0x97   : > { %5701 = vmatpush3.bf16.msra.mxu1 %v1462_v61  ;;  %5672 = vmatprep.mubr.msk.bf16.mxu1 %vm694_vm3, %v4974_v26  ;;  %v6963_v26 = vld [vmem:[%s6425_s27 + $0x34] sm:$0xf]  ;;  %v2907_v58 = vsel %vm6677_vm7, %v5229_v49, %v2906_v21  ;;  %v2910_v54 = vsel %vm6677_vm7, %v2908_v50, %v2909_v51  ;;  %v5165_v61 = vld [vmem:[%s6425_s27 + $0xc8] sm:$0x1]  ;;  %v4977_v10 = vcombine.low %v6290_v41, %v6983_v17  ;;  %v2290_v21 = vshll.u32 %v6885_v40, 16 }
  0x98   : > { %6199 = vmatprep.subr.msk.bf16.mxu1 %vm743_vm0, %v6937_v7  ;;  %v4976_v48 = vcombine.low %v6288_v47, %v6963_v26  ;;  %v2903_v4 = vsel %vm6677_vm7, %v2901_v45, %v2902_v59  ;;  %v5246_v11 = vcombine.low %v2907_v58, %v2910_v54  ;;  %v2915_v8 = vrot.slane %v2913_v63, 4  ;;  %v1200_v45 = vld [vmem:[%s6425_s27] sm:$0xe]  ;;  %v1201_v59 = vld [vmem:[%s6425_s27 + $0xc] sm:$0xe] }
  0x99   : > { %v5245_v2 = vcombine.low %v2900_v57, %v2903_v4  ;;  %v2916_v23 = vrot.slane %v5165_v61, 5  ;;  %v2914_v31 = vsel %vm6677_vm7, %v5230_v6, %v2913_v63  ;;  %v6998_v27 = vrot.slane %v2290_v21, 5  ;;  %v1204_v41 = vld [vmem:[%s6425_s27 + $0x30] sm:$0xe] }
  0x9a   : > { %v2296_v36 = vrot.slane %v2294_v25, 4  ;;  %v4980_v44 = vcombine.low %v6650_v19, %v6656_v35  ;;  %v2300_v47 = vshll.u32 %v6888_v55, 16  ;;  %v5004_v19 = vrot.slane %v1200_v45, 9 }
  0x9b   : > { %v2917_v38 = vsel %vm6677_vm7, %v2915_v8, %v2916_v23  ;;  %8239 = vst [vmem:[#allocation3_spill] sm:$0xff] %v6998_v27  ;;  %v5005_v35 = vrot.slane %v1201_v59, 9  ;;  %v1267_v4 = vrot.slane %v6922_v9, 5  ;;  %v1274_v12 = vrot.slane %v6958_v1, 5  ;;  %v1205_v8 = vld [vmem:[%s6425_s27 + $0x3c] sm:$0xe] }
  0x9c   : > { %v5247_v40 = vcombine.low %v2914_v31, %v2917_v38  ;;  %v2297_v49 = vor.u32 %v2296_v36, %v6998_v27  ;;  %v7018_v51 = vrot.slane %v2300_v47, 5  ;;  %v4981_v58 = vcombine.low %v6671_v0, %v6684_v29  ;;  %v1206_v31 = vld [vmem:[%s6425_s27 + $0x48] sm:$0xe]  ;;  %v6296_v59 = vld [vmem:[%s6425_s27 + $0x38] sm:$0x1] }
  0x9d   : > { %5825 = vmatmul.mubr.msk.bf16.gmra.mrb[20].mxu0 %vm694_vm3, %v5243_v60  ;;  %v4979_v60 = vcombine.low %v6619_v24, %v6625_v37  ;;  %v6293_v24 = vld [vmem:[%s6425_s27 + $0x14] sm:$0x1]  ;;  %v4102_v54 = vsel %vm743_vm0, %v6742_v22, 0  ;;  %v4982_v61 = vcombine.low %v6703_v53, %v6710_v16  ;;  %v4983_v6 = vcombine.low %v6729_v39, %v6737_v43  ;;  %v6294_v16 = vld [vmem:[%s6425_s27 + $0x20] sm:$0x1] }
  0x9e   : > { %5673 = vmatmul.mubr.msk.bf16.gmra.mrb[4].mxu1 %vm694_vm3, %v4975_v28  ;;  %5828 = vmatprep.mubr.msk.bf16.mxu0 %vm694_vm3, %v5244_v20  ;;  %v1260_v28 = vrot.slane %v6915_v34, 5  ;;  %v6240_v20 = vld [vmem:[%s6425_s27 + $0x18] sm:$0xff]   ;;  %v6292_v34 = vld [vmem:[%s6425_s27 + $0x8] sm:$0x1]  ;;  %v1263_v37 = vrot.slane %v6293_v24, 5  ;;  %8240 = vst [vmem:[#allocation4_spill] sm:$0xff] %v7018_v51  ;;  %v4984_v9 = vcombine.low %v6761_v5, %v6773_v30 }
  0x9f   : > { %5676 = vmatprep.mubr.msk.bf16.mxu1 %vm694_vm3, %v4976_v48  ;;  %v1253_v48 = vrot.slane %v6881_v15, 5  ;;  %v1256_v50 = vrot.slane %v6292_v34, 5  ;;  %v1202_v15 = vld [vmem:[%s6425_s27 + $0x18] sm:$0xe]  ;;  %v7023_v63 = vrot.slane %v2297_v49, 4  ;;  %v1270_v22 = vrot.slane %v6294_v16, 5 }
  0xa0   : > { %v1262_v55 = vrot.slane %v1260_v28, 4  ;;  %v5006_v1 = vrot.slane %v1202_v15, 9  ;;  %v7045_v29 = vsel %vm6677_vm7, %v5005_v35, %v1260_v28  ;;  %v1276_v25 = vrot.slane %v1274_v12, 4  ;;  %v5329_v24 = vld [vmem:[%s6425_s27 + $0x18] sm:$0xf] }
  0xa1   : > { %v1255_v57 = vrot.slane %v1253_v48, 4  ;;  %8241 = vst [vmem:[#allocation5_spill] sm:$0xff] %v7023_v63  ;;  %v7041_v0 = vsel %vm6677_vm7, %v5004_v19, %v1253_v48  ;;  %v1284_v47 = vrot.slane %v6296_v59, 5  ;;  %v7082_v49 = vsel %vm743_vm0, %v6937_v7, 0  ;;  %v5330_v7 = vld [vmem:[%s6425_s27 + $0x1c] sm:$0xf] }
  0xa2   : > { %v7049_v53 = vsel %vm6677_vm7, %v1262_v55, %v1263_v37  ;;  %v7086_v34 = vsel %vm6677_vm7, %v5006_v1, %v1267_v4  ;;  %v6246_v37 = vld [vmem:[%s6425_s27 + $0x3c] sm:$0xff]   ;;  %v5009_v35 = vrot.slane %v1205_v8, 9  ;;  %v6297_v55 = vld [vmem:[%s6425_s27 + $0x44] sm:$0x1]  ;;  %v3623_v8 = vshll.u32 %v5329_v24, 16 }
  0xa3   : > { %v7060_v23 = vsel %vm6677_vm7, %v1255_v57, %v1256_v50  ;;  %v1207_v50 = vld [vmem:[%s6425_s27 + $0x54] sm:$0xe]  ;;  %v1291_v15 = vrot.slane %v6297_v55, 5  ;;  %v5333_v39 = vld [vmem:[%s6425_s27 + $0x28] sm:$0xf] }
  0xa4   : > { %v6304_v5 = vld [vmem:[%s6425_s27 + $0x70] sm:$0xf] }
  0xa5   : > { %5829 = vmatmul.mubr.msk.bf16.gmra.mrb[24].mxu0 %vm694_vm3, %v5245_v2  ;;  %v1203_v2 = vld [vmem:[%s6425_s27 + $0x24] sm:$0xe]  ;;  %v1316_v30 = vrot.slane %v6304_v5, 5 }
  0xa6   : > { %5677 = vmatmul.mubr.msk.bf16.gmra.mrb[8].mxu1 %vm694_vm3, %v4977_v10  ;;  %5832 = vmatprep.mubr.msk.bf16.mxu0 %vm694_vm3, %v5246_v11  ;;  %v1281_v10 = vrot.slane %v6963_v26, 5  ;;  %v6244_v11 = vld [vmem:[%s6425_s27 + $0x30] sm:$0xff]   ;;  %v5007_v21 = vrot.slane %v1203_v2, 9 }
  0xa7   : > { %5680 = vmatprep.mubr.msk.bf16.mxu1 %vm694_vm3, %v4978_v18  ;;  %v7056_v26 = vld [vmem:[%s8217_s0 + $0x10] sm:$0x3]  ;;  %v1269_v18 = vrot.slane %v1267_v4, 4  ;;  %v1318_v48 = vrot.slane %v1316_v30, 4 }
  0xa8   : > { %v1283_v45 = vrot.slane %v1281_v10, 4  ;;  %v7093_v19 = vsel %vm6677_vm7, %v5007_v21, %v1274_v12  ;;  %v3633_v21 = vshrl.u32 %v5330_v7, 16 }
  0xa9   : > { %v7102_v4 = vsel %vm6677_vm7, %v1269_v18, %v1270_v22  ;;  %v3620_v22 = vshrl.u32 %v5329_v24, 16  ;;  %v3629_v18 = vshll.u32 %v5330_v7, 16  ;;  %v5332_v24 = vld [vmem:[%s6425_s27 + $0x24] sm:$0xf] }
  0xaa   : > { %v7115_v1 = vsel %vm6677_vm7, %v1283_v45, %v1284_v47 }
  0xab   : > { %v3622_v43 = vrot.slane %v3620_v22, 4  ;;  %v7157_v7 = vrot.slane %v3629_v18, 5  ;;  %v3647_v22 = vshll.u32 %v5332_v24, 16  ;;  %v3657_v18 = vshrl.u32 %v5333_v39, 16 }
  0xad   : > { %5833 = vmatmul.mubr.msk.bf16.gmra.mrb[28].mxu0 %vm694_vm3, %v5247_v40  ;;  %v6295_v40 = vld [vmem:[%s6425_s27 + $0x2c] sm:$0x1]  ;;  %v3649_v27 = vrot.slane %v3647_v22, 5 }
  0xae   : > { %5681 = vmatmul.mubr.msk.bf16.gmra.mrb[12].mxu1 %vm694_vm3, %v4979_v60  ;;  %5838 = vmatprep.mubr.msk.bf16.mxu0 %vm694_vm3, %v6240_v20  ;;  %v1277_v28 = vrot.slane %v6295_v40, 5  ;;  %v1288_v60 = vrot.slane %v6983_v17, 5  ;;  %v6300_v40 = vld [vmem:[%s6425_s27 + $0x50] sm:$0x1]  ;;  %v6305_v17 = vld [vmem:[%s6425_s27 + $0x74] sm:$0x1] }
  0xaf   : > { %5684 = vmatprep.mubr.msk.bf16.mxu1 %vm694_vm3, %v4980_v44  ;;  %v5008_v44 = vrot.slane %v1204_v41, 9  ;;  %v5011_v41 = vrot.slane %v1207_v50, 9  ;;  %v1208_v50 = vld [vmem:[%s6425_s27 + $0x60] sm:$0xe]  ;;  %v5334_v20 = vld [vmem:[%s6425_s27 + $0x2c] sm:$0x1] }
  0xb0   : > { %v1290_v12 = vrot.slane %v1288_v60, 4  ;;  %v7128_v45 = vsel %vm6677_vm7, %v5009_v35, %v1288_v60  ;;  %v6301_v35 = vld [vmem:[%s6425_s27 + $0x5c] sm:$0x1] }
  0xb1   : > { %v7111_v2 = vsel %vm6677_vm7, %v5008_v44, %v1281_v10  ;;  %v1305_v55 = vrot.slane %v6301_v35, 5  ;;  %v1209_v35 = vld [vmem:[%s6425_s27 + $0x6c] sm:$0xe] }
  0xb2   : > { %v7132_v59 = vsel %vm6677_vm7, %v1290_v12, %v1291_v15  ;;  %v6302_v15 = vld [vmem:[%s6425_s27 + $0x64] sm:$0xf]  ;;  %v3635_v12 = vrot.slane %v3633_v21, 4  ;;  %v5013_v5 = vrot.slane %v1209_v35, 9 }
  0xb3   : > { %v6252_v21 = vld [vmem:[%s6425_s27 + $0x60] sm:$0xff]  }
  0xb5   : > { %5839 = vmatmul.mubr.msk.bf16.vlgmr.msra.gmra.mrb[0].mxu0 %vm694_vm3, %v6242_v62  ;;  %v6298_v62 = vld [vmem:[%s6425_s27 + $0x4c] sm:$0xf] }
  0xb6   : > { %5685 = vmatmul.mubr.msk.bf16.gmra.mrb[16].mxu1 %vm694_vm3, %v4981_v58  ;;  %5871 = vmatpush3.bf16.msra.mxu0 %v4102_v54  ;;  %v1295_v57 = vrot.slane %v6298_v62, 5  ;;  %v7106_v58 = vsel %vm6677_vm7, %v1276_v25, %v1277_v28  ;;  %v5010_v54 = vrot.slane %v1206_v31, 9  ;;  %v1298_v28 = vrot.slane %v6300_v40, 5 }
  0xb7   : > { %5688 = vmatprep.mubr.msk.bf16.mxu1 %vm694_vm3, %v4982_v61  ;;  %5842 = vmatprep.mubr.msk.bf16.mxu0 %vm694_vm3, %v6244_v11  ;;  %v6248_v61 = vld [vmem:[%s6425_s27 + $0x48] sm:$0xff]   ;;  %v6299_v11 = vld [vmem:[%s6425_s27 + $0x58] sm:$0xf]  ;;  %v1309_v62 = vrot.slane %v6302_v15, 5  ;;  %v5336_v15 = vld [vmem:[%s6425_s27 + $0x34] sm:$0xf] }
  0xb8   : > { %6205 = vmatprep.subr.msk.bf16.mxu0 %vm743_vm0, %v7056_v26  ;;  %v1302_v16 = vrot.slane %v6299_v11, 5  ;;  %v1297_v31 = vrot.slane %v1295_v57, 4  ;;  %v7136_v47 = vsel %vm6677_vm7, %v5010_v54, %v1295_v57  ;;  %v5331_v57 = vld [vmem:[%s6425_s27 + $0x20] sm:$0x1]  ;;  %v5335_v54 = vld [vmem:[%s6425_s27 + $0x30] sm:$0xf] }
  0xb9   : > { %v5012_v11 = vrot.slane %v1208_v50, 9  ;;  %v3671_v50 = vshll.u32 %v5335_v54, 16  ;;  %v3639_v25 = vshll.u32 %v5331_v57, 16  ;;  %v3677_v36 = vshll.u32 %v5336_v15, 16 }
  0xba   : > { %v7147_v60 = vsel %vm6677_vm7, %v5011_v41, %v1302_v16  ;;  %v7163_v41 = vsel %vm6677_vm7, %v1297_v31, %v1298_v28  ;;  %v1311_v31 = vrot.slane %v1309_v62, 4  ;;  %v3668_v28 = vshrl.u32 %v5335_v54, 16 }
  0xbb   : > { %v7205_v35 = vrot.slane %v3677_v36, 5 }
  0xbd   : > { %5843 = vmatmul.mubr.msk.bf16.gmra.mrb[4].mxu0 %vm694_vm3, %v6246_v37  ;;  %v1304_v37 = vrot.slane %v1302_v16, 4  ;;  %v6303_v16 = vld [vmem:[%s6425_s27 + $0x68] sm:$0x1] }
  0xbe   : > { %5689 = vmatmul.mubr.msk.bf16.gmra.mrb[20].mxu1 %vm694_vm3, %v4983_v6  ;;  %5846 = vmatprep.mubr.msk.bf16.mxu0 %vm694_vm3, %v6248_v61  ;;  %v3625_v6 = vrot.slane %v3623_v8, 5  ;;  %v6250_v61 = vld [vmem:[%s6425_s27 + $0x54] sm:$0xff]   ;;  %v1312_v40 = vrot.slane %v6303_v16, 5  ;;  %v3653_v8 = vshll.u32 %v5333_v39, 16  ;;  %v3636_v16 = vor.u32 %v3635_v12, %v7157_v7 }
  0xbf   : > { %5692 = vmatprep.mubr.msk.bf16.mxu1 %vm694_vm3, %v4984_v9  ;;  %v3644_v9 = vshrl.u32 %v5332_v24, 16  ;;  %v7172_v44 = vsel %vm6677_vm7, %v1304_v37, %v1305_v55  ;;  %v1319_v24 = vrot.slane %v6305_v17, 5  ;;  %v3681_v39 = vshrl.u32 %v5336_v15, 16 }
  0xc0   : > { %v3626_v10 = vor.u32 %v3625_v6, %v3622_v43  ;;  %v7178_v37 = vrot.slane %v3653_v8, 5  ;;  %v3659_v55 = vrot.slane %v3657_v18, 4  ;;  %v8242_v43 = vcombine.low %v6782_v52, %v6793_v46  ;;  %v6306_v8 = vld [vmem:[%s6425_s27 + $0x7c] sm:$0xf]  ;;  %v7214_v18 = vld [vmem:[%s6425_s27 + $0x38] sm:$0x1] }
  0xc1   : > { %v3646_v38 = vrot.slane %v3644_v9, 4  ;;  %v7187_v17 = vsel %vm6677_vm7, %v5012_v11, %v1309_v62  ;;  %v7191_v57 = vsel %vm6677_vm7, %v1311_v31, %v1312_v40  ;;  %v3670_v6 = vrot.slane %v3668_v28, 4  ;;  %8244 = vst [vmem:[#allocation6_spill] sm:$0xff] %v7214_v18 }
  0xc2   : > { %v3673_v12 = vrot.slane %v3671_v50, 5  ;;  %v8243_v52 = vcombine.low %v6814_v33, %v6819_v56  ;;  %v3627_v46 = vrot.slane %v3626_v10, 4  ;;  %v3637_v54 = vrot.slane %v3636_v16, 4  ;;  %v6254_v33 = vld [vmem:[%s6425_s27 + $0x6c] sm:$0xff]   ;;  %v1211_v16 = vld [vmem:[%s6425_s27 + $0x84] sm:$0xe] }
  0xc3   : > { %v3663_v62 = vshll.u32 %v5334_v20, 16  ;;  %v7199_v11 = vsel %vm6677_vm7, %v5013_v5, %v1316_v30  ;;  %v7203_v40 = vsel %vm6677_vm7, %v1318_v48, %v1319_v24  ;;  %v3683_v9 = vrot.slane %v3681_v39, 4  ;;  %v6255_v48 = vld [vmem:[%s6425_s27 + $0x78] sm:$0xff]  }
  0xc4   : > { %v3650_v10 = vor.u32 %v3649_v27, %v3646_v38  ;;  %v3660_v20 = vor.u32 %v3659_v55, %v7178_v37  ;;  %v1323_v30 = vrot.slane %v6306_v8, 5  ;;  %v3674_v38 = vor.u32 %v3673_v12, %v3670_v6  ;;  %v5338_v5 = vld [vmem:[%s6425_s27 + $0x3c] sm:$0xf] }
  0xc5   : > { %5847 = vmatmul.mubr.msk.bf16.gmra.mrb[8].mxu0 %vm694_vm3, %v6250_v61  ;;  %v3641_v61 = vrot.slane %v3639_v25, 5  ;;  %v1210_v25 = vld [vmem:[%s6425_s27 + $0x78] sm:$0xe]  ;;  %v7230_v50 = vrot.slane %v3663_v62, 5  ;;  %v3684_v39 = vor.u32 %v3683_v9, %v7205_v35  ;;  %v3687_v55 = vshll.u32 %v7214_v18, 16 }
  0xc6   : > { %5693 = vmatmul.mubr.msk.bf16.gmra.mrb[24].mxu1 %vm694_vm3, %v8242_v43  ;;  %5850 = vmatprep.mubr.msk.bf16.mxu0 %vm694_vm3, %v6252_v21  ;;  %v3632_v21 = vsel %vm6451_vm4, %v3627_v46, %v7157_v7  ;;  %v5014_v24 = vrot.slane %v1210_v25, 9  ;;  %v6307_v43 = vld [vmem:[%s6425_s27 + $0x88] sm:$0xf]  ;;  %v7238_v7 = vld [vmem:[%s6425_s27 + $0x40] sm:$0xf]  ;;  %v3651_v12 = vrot.slane %v3650_v10, 4  ;;  %v8246_v62 = vcombine.low %v6834_v14, %v6843_v42 }
  0xc7   : > { %5696 = vmatprep.mubr.msk.bf16.mxu1 %vm694_vm3, %v8243_v52  ;;  %v3642_v31 = vsel %vm6451_vm4, %v3637_v54, %v3641_v61  ;;  %v1330_v6 = vrot.slane %v6307_v43, 5  ;;  %8245 = vst [vmem:[#allocation7_spill] sm:$0xff] %v7238_v7  ;;  %v3661_v52 = vrot.slane %v3660_v20, 4  ;;  %v1325_v46 = vrot.slane %v1323_v30, 4  ;;  %v6308_v54 = vld [vmem:[%s6425_s27 + $0x80] sm:$0x1] }
  0xc8   : > { %v1326_v61 = vrot.slane %v6308_v54, 5  ;;  %v3675_v9 = vrot.slane %v3674_v38, 4  ;;  %v5015_v25 = vrot.slane %v1211_v16, 9  ;;  %v3692_v8 = vshrl.u32 %v5338_v5, 16  ;;  %v6256_v10 = vld [vmem:[%s6425_s27 + $0x84] sm:$0xff]  }
  0xc9   : > { %v3695_v43 = vshll.u32 %v5338_v5, 16  ;;  %v7252_v20 = vcombine.low %v3632_v21, %v3642_v31  ;;  %v7256_v14 = vsel %vm743_vm0, %v7056_v26, 0  ;;  %v3705_v38 = vshrl.u32 %v7238_v7, 16  ;;  %v6257_v21 = vld [vmem:[%s6425_s27 + $0x90] sm:$0xff]   ;;  %v6313_v18 = vld [vmem:[%s6425_s27 + $0xa0] sm:$0xf] }
  0xca   : > { %v3685_v16 = vrot.slane %v3684_v39, 4  ;;  %v3689_v5 = vrot.slane %v3687_v55, 5  ;;  %v1332_v54 = vrot.slane %v1330_v6, 4  ;;  %v3656_v31 = vsel %vm6451_vm4, %v3651_v12, %v7178_v37 }
  0xcb   : > { %v3666_v26 = vsel %vm6451_vm4, %v3661_v52, %v7230_v50  ;;  %v7271_v39 = vsel %vm6677_vm7, %v5014_v24, %v1323_v30  ;;  %v7275_v55 = vsel %vm6677_vm7, %v1325_v46, %v1326_v61  ;;  %v3680_v37 = vsel %vm6451_vm4, %v3675_v9, %v7205_v35  ;;  %v5344_v30 = vld [vmem:[%s6425_s27 + $0x54] sm:$0xf]  ;;  %v7292_v24 = vld [vmem:[%s6425_s27 + $0x58] sm:$0xf]  ;;  %v7297_v61 = vld [vmem:[%s6425_s27 + $0x90] sm:$0xe] }
  0xcc   : > { %v7288_v12 = vsel %vm6677_vm7, %v5015_v25, %v1330_v6  ;;  %v3694_v50 = vrot.slane %v3692_v8, 4  ;;  %v3697_v52 = vrot.slane %v3695_v43, 5  ;;  %v3707_v46 = vrot.slane %v3705_v38, 4 }
  0xcd   : > { %5851 = vmatmul.mubr.msk.bf16.gmra.mrb[12].mxu0 %vm694_vm3, %v6254_v33  ;;  %v8247_v33 = vcombine.low %v7041_v0, %v7060_v23  ;;  %v6309_v0 = vld [vmem:[%s6425_s27 + $0x8c] sm:$0x1]  ;;  %v3690_v36 = vsel %vm6451_vm4, %v3685_v16, %v3689_v5  ;;  %v3740_v25 = vshrl.u32 %v5344_v30, 16  ;;  %v3743_v8 = vshll.u32 %v5344_v30, 16 }
  0xce   : > { %5697 = vmatmul.mubr.msk.bf16.gmra.mrb[28].mxu1 %vm694_vm3, %v8246_v62  ;;  %5854 = vmatprep.mubr.msk.bf16.mxu0 %vm694_vm3, %v6255_v48  ;;  %v3701_v48 = vshll.u32 %v7238_v7, 16  ;;  %v1333_v23 = vrot.slane %v6309_v0, 5  ;;  %v5341_v62 = vld [vmem:[%s6425_s27 + $0x48] sm:$0xf]  ;;  %v7281_v0 = vld [vmem:[%s6425_s27 + $0x4c] sm:$0xf]  ;;  %v8249_v38 = vcombine.low %v7045_v29, %v7049_v53  ;;  %v7315_v16 = vcombine.low %v3656_v31, %v3666_v26 }
  0xcf   : > { %5702 = vmatprep.mubr.msk.bf16.mxu1 %vm694_vm3, %v8247_v33  ;;  %v7278_v33 = vld [vmem:[%s6425_s27 + $0x44] sm:$0x1]  ;;  %v3716_v27 = vshrl.u32 %v5341_v62, 16  ;;  %v3719_v15 = vshll.u32 %v5341_v62, 16  ;;  %v3725_v6 = vshll.u32 %v7281_v0, 16  ;;  %v3729_v9 = vshrl.u32 %v7281_v0, 16 }
  0xd0   : > { %8248 = vst [vmem:[#allocation8_spill] sm:$0xff] %v7278_v33  ;;  %v7294_v28 = vrot.slane %v3701_v48, 5  ;;  %v7303_v35 = vsel %vm6677_vm7, %v1332_v54, %v1333_v23  ;;  %v3749_v43 = vshll.u32 %v7292_v24, 16  ;;  %v3753_v48 = vshrl.u32 %v7292_v24, 16  ;;  %v5347_v31 = vld [vmem:[%s6425_s27 + $0x60] sm:$0xf] }
  0xd1   : > { %v3711_v5 = vshll.u32 %v7278_v33, 16  ;;  %v5016_v54 = vrot.slane %v7297_v61, 9  ;;  %v8250_v23 = vcombine.low %v7086_v34, %v7102_v4  ;;  %v7326_v29 = vcombine.low %v3680_v37, %v3690_v36  ;;  %v6258_v26 = vld [vmem:[%s6425_s27 + $0x9c] sm:$0xff]   ;;  %v6259_v30 = vld [vmem:[%s6425_s27 + $0xa8] sm:$0xff]  }
  0xd2   : > { %v3698_v53 = vor.u32 %v3697_v52, %v3694_v50  ;;  %v3718_v62 = vrot.slane %v3716_v27, 4  ;;  %v7337_v34 = vrot.slane %v3725_v6, 5  ;;  %v3731_v4 = vrot.slane %v3729_v9, 4  ;;  %v6310_v36 = vld [vmem:[%s8217_s0 + $0x8] sm:$0x3] }
  0xd3   : > { %v3742_v27 = vrot.slane %v3740_v25, 4  ;;  %v3745_v37 = vrot.slane %v3743_v8, 5  ;;  %v7346_v50 = vrot.slane %v3749_v43, 5  ;;  %v3755_v52 = vrot.slane %v3753_v48, 4  ;;  %v6311_v6 = vld [vmem:[%s6425_s27 + $0x94] sm:$0xf] }
  0xd4   : > { %v7352_v9 = vld [vmem:[%s6425_s27 + $0x64] sm:$0xf]  ;;  %v3764_v61 = vshrl.u32 %v5347_v31, 16  ;;  %v7354_v22 = vrot.slane %v3698_v53, 4  ;;  %v1344_v25 = vrot.slane %v6313_v18, 5  ;;  %v3732_v43 = vor.u32 %v3731_v4, %v7337_v34 }
  0xd5   : > { %5855 = vmatmul.mubr.msk.bf16.gmra.mrb[16].mxu0 %vm694_vm3, %v6256_v10  ;;  %8251 = vst [vmem:[#allocation9_spill] sm:$0xff] %v7352_v9  ;;  %v3767_v10 = vshll.u32 %v5347_v31, 16  ;;  %v3746_v31 = vor.u32 %v3745_v37, %v3742_v27  ;;  %v3756_v53 = vor.u32 %v3755_v52, %v7346_v50  ;;  %v8252_v18 = vcombine.low %v7093_v19, %v7106_v58  ;;  %v6260_v37 = vld [vmem:[%s6425_s27 + $0xb4] sm:$0xff]  }
  0xd6   : > { %5703 = vmatmul.mubr.msk.bf16.vlgmr.msra.gmra.mrb[0].mxu1 %vm694_vm3, %v8249_v38  ;;  %5858 = vmatprep.mubr.msk.bf16.mxu0 %vm694_vm3, %v6257_v21  ;;  %v3721_v21 = vrot.slane %v3719_v15, 5  ;;  %v7335_v38 = vld [vmem:[%s6425_s27 + $0x50] sm:$0x1]  ;;  %v7344_v15 = vld [vmem:[%s6425_s27 + $0x5c] sm:$0x1]  ;;  %v8253_v27 = vcombine.low %v7111_v2, %v7115_v1  ;;  %v1346_v52 = vrot.slane %v1344_v25, 4 }
  0xd7   : > { %5735 = vmatpush3.bf16.msra.mxu1 %v7082_v49  ;;  %5706 = vmatprep.mubr.msk.bf16.mxu1 %vm694_vm3, %v8250_v23  ;;  %v3708_v49 = vor.u32 %v3707_v46, %v7294_v28  ;;  %v7348_v46 = vrot.slane %v3711_v5, 5  ;;  %v1337_v23 = vrot.slane %v6311_v6, 5  ;;  %v3735_v48 = vshll.u32 %v7335_v38, 16  ;;  %v1213_v5 = vld [vmem:[%s6425_s27 + $0x9c] sm:$0xe] }
  0xd8   : > { %6201 = vmatprep.subr.msk.bf16.mxu1 %vm743_vm0, %v6310_v36  ;;  %v6312_v36 = vld [vmem:[%s6425_s27 + $0x98] sm:$0x1]  ;;  %v3722_v7 = vor.u32 %v3721_v21, %v3718_v62  ;;  %v3759_v6 = vshll.u32 %v7344_v15, 16  ;;  %v3777_v62 = vshrl.u32 %v7352_v9, 16  ;;  %v3769_v4 = vrot.slane %v3767_v10, 5 }
  0xd9   : > { %v1340_v33 = vrot.slane %v6312_v36, 5  ;;  %v3709_v8 = vrot.slane %v3708_v49, 4  ;;  %v3773_v36 = vshll.u32 %v7352_v9, 16  ;;  %v7373_v21 = vsel %vm6677_vm7, %v5016_v54, %v1337_v23  ;;  %v7384_v2 = vld [vmem:[%s6425_s27 + $0x68] sm:$0x1] }
  0xda   : > { %v3766_v49 = vrot.slane %v3764_v61, 4  ;;  %v3723_v19 = vrot.slane %v3722_v7, 4  ;;  %v5017_v58 = vrot.slane %v1213_v5, 9  ;;  %v3733_v3 = vrot.slane %v3732_v43, 4  ;;  %8254 = vst [vmem:[#allocation10_spill] sm:$0xff] %v7384_v2  ;;  %v6261_v5 = vld [vmem:[%s6425_s27 + $0xc0] sm:$0xff]  }
  0xdb   : > { %v3737_v54 = vrot.slane %v3735_v48, 5  ;;  %v3761_v63 = vrot.slane %v3759_v6, 5  ;;  %v1351_v61 = vrot.slane %v6819_v56, 5  ;;  %v3747_v10 = vrot.slane %v3746_v31, 4  ;;  %v1215_v31 = vld [vmem:[%s6425_s27 + $0xb4] sm:$0xe] }
  0xdc   : > { %v3757_v51 = vrot.slane %v3756_v53, 4  ;;  %v7386_v1 = vrot.slane %v3773_v36, 5  ;;  %v3779_v7 = vrot.slane %v3777_v62, 4  ;;  %v3704_v43 = vsel %vm6451_vm4, %v7354_v22, %v7294_v28  ;;  %v6315_v62 = vld [vmem:[%s6425_s27 + $0xb0] sm:$0x1] }
  0xdd   : > { %5859 = vmatmul.mubr.msk.bf16.gmra.mrb[20].mxu0 %vm694_vm3, %v6258_v26  ;;  %v1339_v26 = vrot.slane %v1337_v23, 4  ;;  %v1214_v23 = vld [vmem:[%s6425_s27 + $0xa8] sm:$0xe]  ;;  %v3714_v48 = vsel %vm6451_vm4, %v3709_v8, %v7348_v46  ;;  %v3770_v6 = vor.u32 %v3769_v4, %v3766_v49  ;;  %v3728_v53 = vsel %vm6451_vm4, %v3723_v19, %v7337_v34  ;;  %v5350_v46 = vld [vmem:[%s6425_s27 + $0x6c] sm:$0xf] }
  0xde   : > { %5707 = vmatmul.mubr.msk.bf16.gmra.mrb[4].mxu1 %vm694_vm3, %v8252_v18  ;;  %5862 = vmatprep.mubr.msk.bf16.mxu0 %vm694_vm3, %v6259_v30  ;;  %v6314_v18 = vld [vmem:[%s6425_s27 + $0xa4] sm:$0x1]  ;;  %v7406_v36 = vsel %vm6677_vm7, %v5017_v58, %v1344_v25  ;;  %v5018_v28 = vrot.slane %v1214_v23, 9  ;;  %v1353_v8 = vrot.slane %v1351_v61, 4  ;;  %v3783_v49 = vshll.u32 %v7384_v2, 16 }
  0xdf   : > { %5710 = vmatprep.mubr.msk.bf16.mxu1 %vm694_vm3, %v8253_v27  ;;  %v1347_v30 = vrot.slane %v6314_v18, 5  ;;  %v7398_v56 = vsel %vm6677_vm7, %v1339_v26, %v1340_v33  ;;  %v3738_v33 = vsel %vm6451_vm4, %v3733_v3, %v3737_v54  ;;  %v1354_v26 = vrot.slane %v6315_v62, 5  ;;  %v5353_v18 = vld [vmem:[%s6425_s27 + $0x78] sm:$0xf]  ;;  %v7461_v54 = vld [vmem:[%s6425_s27 + $0xbc] sm:$0x1] }
  0xe0   : > { %v3752_v34 = vsel %vm6451_vm4, %v3747_v10, %v7346_v50  ;;  %v3762_v25 = vsel %vm6451_vm4, %v3757_v51, %v3761_v63  ;;  %v3780_v4 = vor.u32 %v3779_v7, %v7386_v1  ;;  %v5019_v27 = vrot.slane %v1215_v31, 9  ;;  %v7435_v51 = vld [vmem:[%s6425_s27 + $0x70] sm:$0xf]  ;;  %v7465_v10 = vld [vmem:[%s6425_s27 + $0x7c] sm:$0xf] }
  0xe1   : > { %v7410_v22 = vsel %vm6677_vm7, %v1346_v52, %v1347_v30  ;;  %v8256_v3 = vcombine.low %v7128_v45, %v7132_v59  ;;  %v7431_v19 = vrot.slane %v3770_v6, 4  ;;  %v1358_v50 = vrot.slane %v6843_v42, 5  ;;  %8257 = vst [vmem:[#allocation12_spill] sm:$0xff] %v7435_v51  ;;  %8259 = vst [vmem:[#allocation13_spill] sm:$0xff] %v7465_v10  ;;  %v5356_v7 = vld [vmem:[%s6425_s27 + $0x84] sm:$0xf] }
  0xe2   : > { %8255 = vst [vmem:[#allocation11_spill] sm:$0xff] %v7410_v22  ;;  %v3788_v63 = vshrl.u32 %v5350_v46, 16  ;;  %v8258_v45 = vcombine.low %v7136_v47, %v7163_v41  ;;  %v7443_v58 = vcombine.low %v3728_v53, %v3738_v33  ;;  %v7449_v42 = vsel %vm6677_vm7, %v5018_v28, %v1351_v61  ;;  %v6262_v61 = vld [vmem:[%s6425_s27 + $0xcc] sm:$0xff]   ;;  %v7477_v31 = vld [vmem:[%s6425_s27 + $0x88] sm:$0xf] }
  0xe3   : > { %v7452_v30 = vcombine.low %v3752_v34, %v3762_v25  ;;  %v7456_v47 = vsel %vm6677_vm7, %v1353_v8, %v1354_v26  ;;  %v7458_v41 = vrot.slane %v3783_v49, 5  ;;  %v3797_v6 = vshll.u32 %v7435_v51, 16  ;;  %8260 = vst [vmem:[#allocation14_spill] sm:$0xff] %v7477_v31  ;;  %v5359_v62 = vld [vmem:[%s6425_s27 + $0x90] sm:$0xf] }
  0xe4   : > { %v7483_v28 = vrot.slane %v1358_v50, 4  ;;  %v7485_v33 = vrot.slane %v3788_v63, 4  ;;  %v3801_v8 = vshrl.u32 %v7435_v51, 16  ;;  %v3812_v26 = vshrl.u32 %v5353_v18, 16  ;;  %v7492_v25 = vld [vmem:[%s6425_s27 + $0x94] sm:$0xf] }
  0xe5   : > { %5863 = vmatmul.mubr.msk.bf16.gmra.mrb[24].mxu0 %vm694_vm3, %v6260_v37  ;;  %v7429_v37 = vcombine.low %v3704_v43, %v3714_v48  ;;  %v7473_v43 = vsel %vm6677_vm7, %v5019_v27, %v1358_v50  ;;  %v3791_v48 = vshll.u32 %v5350_v46, 16  ;;  %v3815_v49 = vshll.u32 %v5353_v18, 16  ;;  %8261 = vst [vmem:[#allocation15_spill] sm:$0xff] %v7492_v25  ;;  %v7530_v2 = vld [vmem:[%s6425_s27 + $0x8c] sm:$0x1] }
  0xe6   : > { %5711 = vmatmul.mubr.msk.bf16.gmra.mrb[8].mxu1 %vm694_vm3, %v8256_v3  ;;  %5866 = vmatprep.mubr.msk.bf16.mxu0 %vm694_vm3, %v6261_v5  ;;  %v7469_v5 = vrot.slane %v3780_v4, 4  ;;  %v3821_v46 = vshll.u32 %v7465_v10, 16  ;;  %v3825_v34 = vshrl.u32 %v7465_v10, 16  ;;  %v3836_v4 = vshrl.u32 %v5356_v7, 16 }
  0xe7   : > { %5714 = vmatprep.mubr.msk.bf16.mxu1 %vm694_vm3, %v8258_v45  ;;  %v3839_v27 = vshll.u32 %v5356_v7, 16  ;;  %v3845_v3 = vshll.u32 %v7477_v31, 16  ;;  %v3849_v50 = vshrl.u32 %v7477_v31, 16  ;;  %v7502_v45 = vld [vmem:[%s6425_s27 + $0x74] sm:$0x1]  ;;  %v3793_v18 = vrot.slane %v3791_v48, 5 }
  0xe8   : > { %v3860_v52 = vshrl.u32 %v5359_v62, 16  ;;  %v3863_v53 = vshll.u32 %v5359_v62, 16  ;;  %v8262_v7 = vcombine.low %v7147_v60, %v7172_v44  ;;  %v3803_v59 = vrot.slane %v3801_v8, 4  ;;  %v5362_v48 = vld [vmem:[%s6425_s27 + $0x9c] sm:$0xf] }
  0xe9   : > { %v3869_v63 = vshll.u32 %v7492_v25, 16  ;;  %v3873_v23 = vshrl.u32 %v7492_v25, 16  ;;  %v8263_v62 = vcombine.low %v7187_v17, %v7191_v57  ;;  %v7520_v44 = vld [vmem:[%s6425_s27 + $0x80] sm:$0x1]  ;;  %v3814_v60 = vrot.slane %v3812_v26, 4 }
  0xea   : > { %8264 = vst [vmem:[#allocation16_spill] sm:$0xff] %v7520_v44  ;;  %v3838_v31 = vrot.slane %v3836_v4, 4  ;;  %v3841_v8 = vrot.slane %v3839_v27, 5  ;;  %v7524_v10 = vrot.slane %v3845_v3, 5  ;;  %v3851_v51 = vrot.slane %v3849_v50, 4 }
  0xeb   : > { %v7527_v25 = vld [vmem:[%s6425_s27 + $0xa0] sm:$0xf]  ;;  %v3862_v17 = vrot.slane %v3860_v52, 4  ;;  %v3865_v57 = vrot.slane %v3863_v53, 5  ;;  %v3887_v9 = vshll.u32 %v5362_v48, 16  ;;  %v3794_v26 = vor.u32 %v3793_v18, %v7485_v33 }
  0xec   : > { %v3831_v27 = vshll.u32 %v7520_v44, 16  ;;  %v7539_v3 = vld [vmem:[%s6425_s27 + $0x98] sm:$0x1]  ;;  %v3893_v50 = vshll.u32 %v7527_v25, 16  ;;  %v3897_v52 = vshrl.u32 %v7527_v25, 16  ;;  %v3842_v22 = vor.u32 %v3841_v8, %v3838_v31 }
  0xed   : > { %5867 = vmatmul.mubr.msk.bf16.gmra.mrb[28].mxu0 %vm694_vm3, %v6262_v61  ;;  %v7510_v61 = vrot.slane %v3797_v6, 5  ;;  %v3827_v6 = vrot.slane %v3825_v34, 4  ;;  %v3875_v34 = vrot.slane %v3873_v23, 4  ;;  %v3855_v33 = vshll.u32 %v7530_v2, 16 }
  0xee   : > { %5715 = vmatmul.mubr.msk.bf16.gmra.mrb[12].mxu1 %vm694_vm3, %v8262_v7  ;;  %5872 = vmatprep.mubr.msk.bf16.mxu0 %vm694_vm3, %v7252_v20  ;;  %v3817_v7 = vrot.slane %v3815_v49, 5  ;;  %v7522_v20 = vrot.slane %v3821_v46, 5  ;;  %v3807_v49 = vshll.u32 %v7502_v45, 16  ;;  %v7534_v46 = vrot.slane %v3869_v63, 5 }
  0xef   : > { %5718 = vmatprep.mubr.msk.bf16.mxu1 %vm694_vm3, %v8263_v62  ;;  %v3884_v62 = vshrl.u32 %v5362_v48, 16  ;;  %v3804_v4 = vor.u32 %v3803_v59, %v7510_v61  ;;  %v3852_v23 = vor.u32 %v3851_v51, %v7524_v10  ;;  %v3866_v59 = vor.u32 %v3865_v57, %v3862_v17  ;;  %v7572_v57 = vld [vmem:[%s6425_s27 + $0xa4] sm:$0x1] }
  0xf0   : > { %v3818_v53 = vor.u32 %v3817_v7, %v3814_v60  ;;  %v3828_v48 = vor.u32 %v3827_v6, %v7522_v20  ;;  %v3889_v18 = vrot.slane %v3887_v9, 5  ;;  %v8265_v44 = vcombine.low %v7199_v11, %v7203_v40 }
  0xf1   : > { %v3886_v63 = vrot.slane %v3884_v62, 4  ;;  %v8266_v31 = vrot.slane %v7461_v54, 5  ;;  %v3809_v51 = vrot.slane %v3807_v49, 5  ;;  %v3876_v60 = vor.u32 %v3875_v34, %v7534_v46  ;;  %v7575_v34 = vld [vmem:[%s6425_s27 + $0xac] sm:$0xf] }
  0xf2   : > { %v3879_v9 = vshll.u32 %v7539_v3, 16  ;;  %v8267_v11 = vcombine.low %v7271_v39, %v7275_v55  ;;  %v3795_v40 = vrot.slane %v3794_v26, 4  ;;  %v7568_v54 = vrot.slane %v3893_v50, 5 }
  0xf3   : > { %v3819_v7 = vrot.slane %v3818_v53, 4  ;;  %v3829_v6 = vrot.slane %v3828_v48, 4  ;;  %v3833_v8 = vrot.slane %v3831_v27, 5  ;;  %v3857_v17 = vrot.slane %v3855_v33, 5  ;;  %v7585_v48 = vld [vmem:[%s6425_s27 + $0xb0] sm:$0x1] }
  0xf4   : > { %v3843_v39 = vrot.slane %v3842_v22, 4  ;;  %v3853_v55 = vrot.slane %v3852_v23, 4  ;;  %v3867_v62 = vrot.slane %v3866_v59, 4  ;;  %v3890_v49 = vor.u32 %v3889_v18, %v3886_v63 }
  0xf5   : > { %5873 = vmatmul.mubr.msk.bf16.vlgmr.msra.gmra.mrb[0].mxu0 %vm694_vm3, %v7315_v16  ;;  %v7558_v16 = vsel %vm6677_vm7, %v7483_v28, %v8266_v31  ;;  %v3899_v28 = vrot.slane %v3897_v52, 4  ;;  %v3881_v26 = vrot.slane %v3879_v9, 5  ;;  %v3800_v52 = vsel %vm6451_vm4, %v3795_v40, %v7510_v61 }
  0xf6   : > { %5719 = vmatmul.mubr.msk.bf16.gmra.mrb[16].mxu1 %vm694_vm3, %v8265_v44  ;;  %5905 = vmatpush3.bf16.msra.mxu0 %v7256_v14  ;;  %v3805_v14 = vrot.slane %v3804_v4, 4  ;;  %v5365_v44 = vld [vmem:[%s6425_s27 + $0xa8] sm:$0xf]  ;;  %v3903_v22 = vshll.u32 %v7572_v57, 16  ;;  %v3824_v33 = vsel %vm6451_vm4, %v3819_v7, %v7522_v20  ;;  %v3834_v23 = vsel %vm6451_vm4, %v3829_v6, %v3833_v8 }
  0xf7   : > { %5722 = vmatprep.mubr.msk.bf16.mxu1 %vm694_vm3, %v8267_v11  ;;  %5876 = vmatprep.mubr.msk.bf16.mxu0 %vm694_vm3, %v7326_v29  ;;  %v3877_v29 = vrot.slane %v3876_v60, 4  ;;  %v3908_v4 = vshrl.u32 %v5365_v44, 16  ;;  %v3911_v50 = vshll.u32 %v5365_v44, 16  ;;  %v3900_v53 = vor.u32 %v3899_v28, %v7568_v54  ;;  %v5414_v11 = vld [vmem:[%s6425_s27 + $0x48] sm:$0xe] }
  0xf8   : > { %v3810_v27 = vsel %vm6451_vm4, %v3805_v14, %v3809_v51  ;;  %v3917_v59 = vshll.u32 %v7575_v34, 16  ;;  %v3921_v61 = vshrl.u32 %v7575_v34, 16  ;;  %v3848_v63 = vsel %vm6451_vm4, %v3843_v39, %v7524_v10  ;;  %v7650_v39 = vld [vmem:[%s6425_s27 + $0xb8] sm:$0xf] }
  0xf9   : > { %v3858_v18 = vsel %vm6451_vm4, %v3853_v55, %v3857_v17  ;;  %v3872_v20 = vsel %vm6451_vm4, %v3867_v62, %v7534_v46  ;;  %v3891_v31 = vrot.slane %v3890_v49, 4  ;;  %v8268_v51 = vcombine.low %v7288_v12, %v7303_v35 }
  0xfa   : > { %v3910_v10 = vrot.slane %v3908_v4, 4  ;;  %v3913_v60 = vrot.slane %v3911_v50, 5  ;;  %v3927_v9 = vshll.u32 %v7585_v48, 16  ;;  %v8269_v46 = vcombine.low %v7373_v21, %v7398_v56  ;;  %v5368_v21 = vld [vmem:[%s6425_s27 + $0xb4] sm:$0xf] }
  0xfb   : > { %v5035_v12 = vcombine.low %v7449_v42, %v7456_v47  ;;  %v8270_v35 = vsel %vm6451_vm4, %v7469_v5, %v7458_v41  ;;  %v3901_v14 = vrot.slane %v3900_v53, 4  ;;  %v3905_v28 = vrot.slane %v3903_v22, 5  ;;  %v5416_v4 = vld [vmem:[%s6425_s27 + $0x60] sm:$0xe]  ;;  %v5417_v53 = vld [vmem:[%s6425_s27 + $0x6c] sm:$0xe] }
  0xfc   : > { %v5036_v56 = vcombine.low %v7473_v43, %v7558_v16  ;;  %v7633_v44 = vcombine.low %v3800_v52, %v3810_v27  ;;  %v7635_v42 = vrot.slane %v3917_v59, 5  ;;  %v3923_v47 = vrot.slane %v3921_v61, 4  ;;  %v8279_v16 = vld [vmem:[#allocation4_spill] sm:$0xff] }
  0xfd   : > { %5877 = vmatmul.mubr.msk.bf16.gmra.mrb[4].mxu0 %vm694_vm3, %v7429_v37  ;;  %v3882_v37 = vsel %vm6451_vm4, %v3877_v29, %v3881_v26  ;;  %v7637_v41 = vcombine.low %v3824_v33, %v3834_v23  ;;  %v7639_v5 = vcombine.low %v3848_v63, %v3858_v18  ;;  %v3896_v6 = vsel %vm6451_vm4, %v3891_v31, %v7568_v54  ;;  %v8272_v23 = vld [vmem:[#allocation11_spill] sm:$0xff]  ;;  %v5371_v63 = vld [vmem:[%s6425_s27 + $0xc0] sm:$0xf]  ;;  %v8274_v18 = vld [vmem:[#allocation9_spill] sm:$0xff] }
  0xfe   : > { %5723 = vmatmul.mubr.msk.bf16.gmra.mrb[20].mxu1 %vm694_vm3, %v8268_v51  ;;  %5880 = vmatprep.mubr.msk.bf16.mxu0 %vm694_vm3, %v7443_v58  ;;  %v8271_v58 = vsel %vm6451_vm4, %v7431_v19, %v7386_v1  ;;  %v7641_v7 = vcombine.low %v3872_v20, %v3882_v37  ;;  %v5430_v1 = vrot.slane %v5414_v11, 9  ;;  %v5415_v19 = vld [vmem:[%s6425_s27 + $0x54] sm:$0xe]  ;;  %v3914_v8 = vor.u32 %v3913_v60, %v3910_v10  ;;  %v8275_v31 = vld [vmem:[#allocation10_spill] sm:$0xff] }
  0xff   : > { %5726 = vmatprep.mubr.msk.bf16.mxu1 %vm694_vm3, %v8269_v46  ;;  %v5384_v40 = vcombine.low %v8271_v58, %v8270_v35  ;;  %v7647_v17 = vrot.slane %v3927_v9, 5  ;;  %v3932_v55 = vshrl.u32 %v5368_v21, 16  ;;  %v3906_v62 = vsel %vm6451_vm4, %v3901_v14, %v3905_v28  ;;  %v8276_v9 = vld [vmem:[#allocation12_spill] sm:$0xff]  ;;  %v7699_v35 = vld [vmem:[%s6425_s27 + $0xbc] sm:$0x1] }
 0x100   : > { %v3935_v49 = vshll.u32 %v5368_v21, 16  ;;  %v4391_v29 = vrot.slane %v7281_v0, 5  ;;  %v4394_v26 = vrot.slane %v7335_v38, 5  ;;  %v3924_v50 = vor.u32 %v3923_v47, %v7635_v42  ;;  %v7702_v58 = vld [vmem:[%s6425_s27 + $0xc4] sm:$0xf] }
 0x101   : > { %v5431_v52 = vrot.slane %v5415_v19, 9  ;;  %v4398_v54 = vrot.slane %v7292_v24, 5  ;;  %v4401_v27 = vrot.slane %v7344_v15, 5  ;;  %v3941_v22 = vshll.u32 %v7650_v39, 16  ;;  %v5418_v19 = vld [vmem:[%s6425_s27 + $0x78] sm:$0xe] }
 0x102   : > { %v3945_v33 = vshrl.u32 %v7650_v39, 16  ;;  %v7667_v0 = vsel %vm6677_vm7, %v5430_v1, %v4391_v29  ;;  %v4393_v38 = vrot.slane %v4391_v29, 4  ;;  %v8273_v59 = vcombine.low %v7406_v36, %v8272_v23  ;;  %v8277_v23 = vld [vmem:[#allocation13_spill] sm:$0xff] }
 0x103   : > { %v7674_v24 = vcombine.low %v3896_v6, %v3906_v62  ;;  %v7678_v15 = vsel %vm6677_vm7, %v5431_v52, %v4398_v54  ;;  %v5432_v61 = vrot.slane %v5416_v4, 9  ;;  %v4405_v20 = vrot.slane %v8274_v18, 5  ;;  %v6263_v6 = vld [vmem:[%s6425_s27 + $0xc] sm:$0xff]  }
 0x104   : > { %v7684_v36 = vsel %vm6677_vm7, %v4393_v38, %v4394_v26  ;;  %v4408_v51 = vrot.slane %v8275_v31, 5  ;;  %v5433_v37 = vrot.slane %v5417_v53, 9  ;;  %v4412_v11 = vrot.slane %v8276_v9, 5 }
 0x105   : > { %5881 = vmatmul.mubr.msk.bf16.gmra.mrb[8].mxu0 %vm694_vm3, %v7452_v30  ;;  %v4400_v30 = vrot.slane %v4398_v54, 4  ;;  %v5447_v10 = vcombine.low %v7667_v0, %v7684_v36  ;;  %v4415_v46 = vrot.slane %v7502_v45, 5  ;;  %v7708_v14 = vsel %vm6677_vm7, %v5432_v61, %v4405_v20 }
 0x106   : > { %5727 = vmatmul.mubr.msk.bf16.gmra.mrb[24].mxu1 %vm694_vm3, %v8273_v59  ;;  %5884 = vmatprep.mubr.msk.bf16.mxu0 %vm694_vm3, %v5384_v40  ;;  %v4407_v28 = vrot.slane %v4405_v20, 4  ;;  %v7710_v21 = vrot.slane %v3932_v55, 4  ;;  %v3956_v47 = vshrl.u32 %v5371_v63, 16  ;;  %v7714_v45 = vsel %vm6677_vm7, %v5433_v37, %v4412_v11  ;;  %v5145_v55 = vld [vmem:[%s6425_s27 + $0x78] sm:$0xf]  ;;  %v8278_v59 = vld [vmem:[#allocation16_spill] sm:$0xff] }
 0x107   : > { %5730 = vmatprep.mubr.msk.bf16.mxu1 %vm694_vm3, %v5035_v12  ;;  %v7692_v60 = vsel %vm6677_vm7, %v4400_v30, %v4401_v27  ;;  %v7696_v12 = vrot.slane %v3914_v8, 4  ;;  %v4414_v1 = vrot.slane %v4412_v11, 4  ;;  %v7718_v8 = vrot.slane %v3924_v50, 4 }
 0x108   : > { %v5448_v40 = vcombine.low %v7678_v15, %v7692_v60  ;;  %v7720_v62 = vrot.slane %v3935_v49, 5  ;;  %v3959_v29 = vshll.u32 %v5371_v63, 16  ;;  %v7724_v26 = vsel %vm6677_vm7, %v4407_v28, %v4408_v51  ;;  %v8281_v28 = vld [vmem:[#allocation14_spill] sm:$0xff] }
 0x109   : > { %v7727_v4 = vrot.slane %v3941_v22, 5  ;;  %v7729_v52 = vrot.slane %v3945_v33, 4  ;;  %v5449_v54 = vcombine.low %v7708_v14, %v7724_v26  ;;  %v7735_v27 = vsel %vm6677_vm7, %v4414_v1, %v4415_v46  ;;  %v5419_v33 = vld [vmem:[%s6425_s27 + $0x84] sm:$0xe]  ;;  %v6264_v1 = vld [vmem:[%s6425_s27 + $0x18] sm:$0xff]  }
 0x10a   : > { %v3951_v49 = vshll.u32 %v7699_v35, 16  ;;  %v3965_v50 = vshll.u32 %v7702_v58, 16  ;;  %v5450_v53 = vcombine.low %v7714_v45, %v7735_v27  ;;  %v5434_v22 = vrot.slane %v5418_v19, 9  ;;  %v6326_v60 = vld [vmem:[%s6425_s27 + $0xa0] sm:$0xf] }
 0x10b   : > { %v3958_v38 = vrot.slane %v3956_v47, 4  ;;  %v4422_v30 = vrot.slane %v8278_v59, 5  ;;  %v2281_v61 = vshrl.u32 %v5145_v55, 16  ;;  %v3961_v63 = vrot.slane %v3959_v29, 5  ;;  %v5374_v29 = vld [vmem:[%s6425_s27 + $0xcc] sm:$0xf] }
 0x10c   : > { %v3969_v18 = vshrl.u32 %v7702_v58, 16  ;;  %v2284_v43 = vshll.u32 %v5145_v55, 16  ;;  %v5435_v37 = vrot.slane %v5419_v33, 9  ;;  %v3920_v9 = vsel %vm6451_vm4, %v7696_v12, %v7635_v42  ;;  %v7778_v55 = vld [vmem:[%s6425_s27 + $0xd0] sm:$0xf] }
 0x10d   : > { %5885 = vmatmul.mubr.msk.bf16.gmra.mrb[12].mxu0 %vm694_vm3, %v7633_v44  ;;  %v4419_v44 = vrot.slane %v8277_v23, 5  ;;  %v2283_v51 = vrot.slane %v2281_v61, 4  ;;  %v3938_v11 = vor.u32 %v7720_v62, %v7710_v21  ;;  %v4426_v47 = vrot.slane %v8281_v28, 5  ;;  %v6265_v21 = vld [vmem:[%s6425_s27 + $0x24] sm:$0xff]   ;;  %v6330_v27 = vld [vmem:[%s6425_s27 + $0xac] sm:$0xf] }
 0x10e   : > { %5731 = vmatmul.mubr.msk.bf16.gmra.mrb[28].mxu1 %vm694_vm3, %v5036_v56  ;;  %5888 = vmatprep.mubr.msk.bf16.mxu0 %vm694_vm3, %v7637_v41  ;;  %v8280_v56 = vld [vmem:[#allocation5_spill] sm:$0xff]  ;;  %v2286_v46 = vrot.slane %v2284_v43, 5  ;;  %v3930_v19 = vsel %vm6451_vm4, %v7718_v8, %v7647_v17  ;;  %v4429_v12 = vrot.slane %v7530_v2, 5  ;;  %v7786_v62 = vrot.slane %v3965_v50, 5  ;;  %v5420_v8 = vld [vmem:[%s6425_s27 + $0x90] sm:$0xe] }
 0x10f   : > { %5736 = vmatprep.mubr.msk.bf16.mxu1 %vm694_vm3, %v6263_v6  ;;  %v2303_v41 = vsel %vm6451_vm4, %v8280_v56, %v8279_v16  ;;  %v7760_v20 = vsel %vm6677_vm7, %v5434_v22, %v4419_v44  ;;  %v4421_v31 = vrot.slane %v4419_v44, 4  ;;  %v3948_v6 = vor.u32 %v7729_v52, %v7727_v4  ;;  %v7792_v52 = vld [vmem:[%s6425_s27 + $0xc8] sm:$0x1]  ;;  %v8283_v16 = vld [vmem:[#allocation2_spill] sm:$0xff] }
 0x110   : > { %v3971_v22 = vrot.slane %v3969_v18, 4  ;;  %v2287_v17 = vor.u32 %v2286_v46, %v2283_v51  ;;  %v3953_v23 = vrot.slane %v3951_v49, 5  ;;  %v3962_v44 = vor.u32 %v3961_v63, %v3958_v38  ;;  %v8284_v51 = vld [vmem:[#allocation3_spill] sm:$0xff] }
 0x111   : > { %v7782_v42 = vsel %vm6677_vm7, %v4421_v31, %v4422_v30  ;;  %v7796_v59 = vsel %vm6677_vm7, %v5435_v37, %v4426_v47  ;;  %v4428_v30 = vrot.slane %v4426_v47, 4  ;;  %v3980_v2 = vshrl.u32 %v5374_v29, 16 }
 0x112   : > { %v5451_v33 = vcombine.low %v7760_v20, %v7782_v42  ;;  %v3983_v50 = vshll.u32 %v5374_v29, 16  ;;  %v3989_v61 = vshll.u32 %v7778_v55, 16  ;;  %v2288_v18 = vrot.slane %v2287_v17, 4  ;;  %v6266_v29 = vld [vmem:[%s6425_s27 + $0x30] sm:$0xff]  }
 0x113   : > { %v3993_v49 = vshrl.u32 %v7778_v55, 16  ;;  %v7807_v38 = vsel %vm6677_vm7, %v4428_v30, %v4429_v12  ;;  %v5436_v63 = vrot.slane %v5420_v8, 9  ;;  %v3972_v56 = vor.u32 %v3971_v22, %v7786_v62 }
 0x114   : > { %v3975_v31 = vshll.u32 %v7792_v52, 16  ;;  %v5452_v37 = vcombine.low %v7796_v59, %v7807_v38  ;;  %v5390_v46 = vcombine.low %v3920_v9, %v3930_v19  ;;  %v3939_v28 = vrot.slane %v3938_v11, 4  ;;  %v5421_v11 = vld [vmem:[%s6425_s27 + $0x9c] sm:$0xe] }
 0x115   : > { %5889 = vmatmul.mubr.msk.bf16.gmra.mrb[16].mxu0 %vm694_vm3, %v7639_v5  ;;  %v8282_v5 = vld [vmem:[#allocation15_spill] sm:$0xff]  ;;  %v3949_v47 = vrot.slane %v3948_v6, 4  ;;  %v3963_v12 = vrot.slane %v3962_v44, 4  ;;  %v4436_v8 = vrot.slane %v7539_v3, 5  ;;  %v3982_v30 = vrot.slane %v3980_v2, 4  ;;  %v6267_v19 = vld [vmem:[%s6425_s27 + $0x3c] sm:$0xff]  }
 0x116   : > { %5737 = vmatmul.mubr.msk.bf16.vlgmr.msra.gmra.mrb[0].mxu1 %vm694_vm3, %v6264_v1  ;;  %5892 = vmatprep.mubr.msk.bf16.mxu0 %vm694_vm3, %v7641_v7  ;;  %v4433_v43 = vrot.slane %v8282_v5, 5  ;;  %v2293_v7 = vsel %vm6451_vm4, %v2288_v18, %v8284_v51  ;;  %v3985_v18 = vrot.slane %v3983_v50, 5  ;;  %v7830_v5 = vrot.slane %v3989_v61, 5 }
 0x117   : > { %5939 = vmatpush3.bf16.msra.mxu1 %v8283_v16  ;;  %5740 = vmatprep.mubr.msk.bf16.mxu1 %vm694_vm3, %v6265_v21  ;;  %v7819_v1 = vcombine.low %v2293_v7, %v2303_v41  ;;  %v7823_v21 = vld [vmem:[%s6425_s27 + $0xd4] sm:$0x1]  ;;  %v3995_v9 = vrot.slane %v3993_v49, 4  ;;  %v3973_v41 = vrot.slane %v3972_v56, 4  ;;  %v3977_v6 = vrot.slane %v3975_v31, 5 }
 0x118   : > { %v7827_v22 = vsel %vm6677_vm7, %v5436_v63, %v4433_v43  ;;  %v4435_v17 = vrot.slane %v4433_v43, 4  ;;  %v3944_v63 = vsel %vm6451_vm4, %v3939_v28, %v7727_v4  ;;  %v3954_v2 = vsel %vm6451_vm4, %v3949_v47, %v3953_v23  ;;  %v6317_v16 = vld [vmem:[%s6425_s27 + $0x1c] sm:$0xf]  ;;  %v5422_v28 = vld [vmem:[%s6425_s27 + $0xa8] sm:$0xe] }
 0x119   : > { %v3999_v50 = vshll.u32 %v7823_v21, 16  ;;  %v5437_v61 = vrot.slane %v5421_v11, 9  ;;  %v4440_v49 = vrot.slane %v7527_v25, 5  ;;  %v3968_v4 = vsel %vm6451_vm4, %v3963_v12, %v7786_v62  ;;  %v5410_v62 = vld [vmem:[%s6425_s27 + $0x18] sm:$0xe]  ;;  %v6268_v47 = vld [vmem:[%s6425_s27 + $0x48] sm:$0xff]  }
 0x11a   : > { %v7836_v44 = vsel %vm6677_vm7, %v4435_v17, %v4436_v8  ;;  %v3996_v43 = vor.u32 %v3995_v9, %v7830_v5  ;;  %v4443_v23 = vrot.slane %v7572_v57, 5  ;;  %v3978_v25 = vsel %vm6451_vm4, %v3973_v41, %v3977_v6  ;;  %v6318_v11 = vld [vmem:[%s6425_s27 + $0x20] sm:$0x1] }
 0x11b   : > { %v5453_v3 = vcombine.low %v7827_v22, %v7836_v44  ;;  %v4363_v56 = vrot.slane %v6317_v16, 5  ;;  %v7862_v31 = vsel %vm6677_vm7, %v5437_v61, %v4440_v49  ;;  %v4442_v51 = vrot.slane %v4440_v49, 4  ;;  %v5423_v49 = vld [vmem:[%s6425_s27 + $0xb4] sm:$0xe] }
 0x11c   : > { %v5391_v7 = vcombine.low %v3944_v63, %v3954_v2  ;;  %v3997_v17 = vrot.slane %v3996_v43, 4  ;;  %v5438_v41 = vrot.slane %v5422_v28, 9  ;;  %v4447_v6 = vrot.slane %v7575_v34, 5  ;;  %v5411_v2 = vld [vmem:[%s6425_s27 + $0x24] sm:$0xe] }
 0x11d   : > { %5893 = vmatmul.mubr.msk.bf16.gmra.mrb[20].mxu0 %vm694_vm3, %v7674_v24  ;;  %v3986_v24 = vor.u32 %v3985_v18, %v3982_v30  ;;  %v7867_v57 = vsel %vm6677_vm7, %v4442_v51, %v4443_v23  ;;  %v6269_v30 = vld [vmem:[%s6425_s27 + $0x54] sm:$0xff]   ;;  %v5426_v18 = vrot.slane %v5410_v62, 9  ;;  %v4365_v9 = vrot.slane %v4363_v56, 4  ;;  %v6321_v28 = vld [vmem:[%s6425_s27 + $0x2c] sm:$0x1] }
 0x11e   : > { %5741 = vmatmul.mubr.msk.bf16.gmra.mrb[4].mxu1 %vm694_vm3, %v6266_v29  ;;  %5896 = vmatprep.mubr.msk.bf16.mxu0 %vm694_vm3, %v5390_v46  ;;  %v4001_v46 = vrot.slane %v3999_v50, 5  ;;  %v5392_v29 = vcombine.low %v3968_v4, %v3978_v25  ;;  %v5454_v8 = vcombine.low %v7862_v31, %v7867_v57  ;;  %v4450_v63 = vrot.slane %v7585_v48, 5  ;;  %v6319_v50 = vld [vmem:[%s6425_s27 + $0x28] sm:$0xf]  ;;  %v5412_v25 = vld [vmem:[%s6425_s27 + $0x30] sm:$0xe] }
 0x11f   : > { %5744 = vmatprep.mubr.msk.bf16.mxu1 %vm694_vm3, %v6267_v19  ;;  %v3987_v12 = vrot.slane %v3986_v24, 4  ;;  %v4366_v19 = vrot.slane %v6318_v11, 5  ;;  %v4370_v61 = vrot.slane %v6319_v50, 5  ;;  %v7890_v48 = vsel %vm6677_vm7, %v5438_v41, %v4447_v6  ;;  %v6271_v11 = vld [vmem:[%s6425_s27 + $0x6c] sm:$0xff]   ;;  %v8285_v41 = vld [vmem:[#allocation6_spill] sm:$0xff] }
 0x120   : > { %v4002_v34 = vsel %vm6451_vm4, %v3997_v17, %v4001_v46  ;;  %v4449_v24 = vrot.slane %v4447_v6, 4  ;;  %v4364_v43 = vsel %vm6677_vm7, %v5426_v18, %v4363_v56  ;;  %v5427_v51 = vrot.slane %v5411_v2, 9  ;;  %v5424_v50 = vld [vmem:[%s6425_s27 + $0xc0] sm:$0xe]  ;;  %v6335_v31 = vld [vmem:[%s6425_s27 + $0xc8] sm:$0x1] }
 0x121   : > { %v3992_v4 = vsel %vm6451_vm4, %v3987_v12, %v7830_v5  ;;  %v4367_v23 = vsel %vm6677_vm7, %v4365_v9, %v4366_v19  ;;  %v6320_v5 = vld [vmem:[%s6425_s27 + $0x34] sm:$0xf]  ;;  %v6270_v12 = vld [vmem:[%s6425_s27 + $0x60] sm:$0xff]   ;;  %v5428_v18 = vrot.slane %v5412_v25, 9  ;;  %v4457_v9 = vrot.slane %v7699_v35, 5 }
 0x122   : > { %v4377_v16 = vrot.slane %v6320_v5, 5  ;;  %v7901_v62 = vsel %vm6677_vm7, %v4449_v24, %v4450_v63  ;;  %v5393_v46 = vcombine.low %v3992_v4, %v4002_v34  ;;  %v5443_v17 = vcombine.low %v4364_v43, %v4367_v23  ;;  %v5413_v24 = vld [vmem:[%s6425_s27 + $0x3c] sm:$0xe] }
 0x123   : > { %v5455_v56 = vcombine.low %v7890_v48, %v7901_v62  ;;  %v4380_v6 = vrot.slane %v8285_v41, 5  ;;  %v4371_v35 = vsel %vm6677_vm7, %v5427_v51, %v4370_v61  ;;  %v5440_v5 = vrot.slane %v5424_v50, 9 }
 0x124   : > { %v4379_v19 = vrot.slane %v4377_v16, 4  ;;  %v4378_v23 = vsel %vm6677_vm7, %v5428_v18, %v4377_v16  ;;  %v4464_v51 = vrot.slane %v7792_v52, 5  ;;  %v2444_v57 = vshll.u32 %v6335_v31, 16 }
 0x125   : > { %5897 = vmatmul.mubr.msk.bf16.gmra.mrb[24].mxu0 %vm694_vm3, %v5391_v7  ;;  %v5439_v7 = vrot.slane %v5423_v49, 9 }
 0x126   : > { %5745 = vmatmul.mubr.msk.bf16.gmra.mrb[8].mxu1 %vm694_vm3, %v6268_v47  ;;  %5900 = vmatprep.mubr.msk.bf16.mxu0 %vm694_vm3, %v5392_v29  ;;  %v4373_v47 = vrot.slane %v6321_v28, 5  ;;  %v4454_v29 = vrot.slane %v7650_v39, 5  ;;  %v8286_v39 = vld [vmem:[#allocation7_spill] sm:$0xff]  ;;  %v4381_v25 = vsel %vm6677_vm7, %v4379_v19, %v4380_v6  ;;  %v5429_v28 = vrot.slane %v5413_v24, 9 }
 0x127   : > { %5748 = vmatprep.mubr.msk.bf16.mxu1 %vm694_vm3, %v6269_v30  ;;  %v4372_v30 = vrot.slane %v4370_v61, 4  ;;  %v4384_v49 = vrot.slane %v8286_v39, 5  ;;  %v4461_v61 = vrot.slane %v7702_v58, 5  ;;  %v6322_v39 = vld [vmem:[%s6425_s27 + $0x70] sm:$0xf]  ;;  %v4468_v24 = vrot.slane %v7778_v55, 5 }
 0x128   : > { %v7913_v63 = vsel %vm6677_vm7, %v5439_v7, %v4454_v29  ;;  %v4456_v2 = vrot.slane %v4454_v29, 4  ;;  %v5142_v7 = vld [vmem:[%s6425_s27 + $0x6c] sm:$0xf]  ;;  %v8287_v29 = vld [vmem:[#allocation8_spill] sm:$0xff] }
 0x129   : > { %v4374_v34 = vsel %vm6677_vm7, %v4372_v30, %v4373_v47  ;;  %v4386_v47 = vrot.slane %v4384_v49, 4  ;;  %v6272_v30 = vld [vmem:[%s6425_s27 + $0x78] sm:$0xff]   ;;  %v7944_v16 = vsel %vm6677_vm7, %v5440_v5, %v4461_v61  ;;  %v4463_v18 = vrot.slane %v4461_v61, 4 }
 0x12a   : > { %v7920_v4 = vsel %vm6677_vm7, %v4456_v2, %v4457_v9  ;;  %v5445_v9 = vcombine.low %v4378_v23, %v4381_v25  ;;  %v2257_v19 = vshrl.u32 %v5142_v7, 16  ;;  %v2260_v41 = vshll.u32 %v5142_v7, 16 }
 0x12b   : > { %v5456_v43 = vcombine.low %v7913_v63, %v7920_v4  ;;  %v7949_v58 = vsel %vm6677_vm7, %v4463_v18, %v4464_v51  ;;  %v4385_v6 = vsel %vm6677_vm7, %v5429_v28, %v4384_v49  ;;  %v4471_v49 = vrot.slane %v7823_v21, 5  ;;  %v6274_v51 = vld [vmem:[%s6425_s27 + $0x90] sm:$0xff]   ;;  %v6275_v21 = vld [vmem:[%s6425_s27 + $0x9c] sm:$0xff]  }
 0x12c   : > { %v5457_v50 = vcombine.low %v7944_v16, %v7949_v58  ;;  %v2259_v23 = vrot.slane %v2257_v19, 4  ;;  %v2262_v25 = vrot.slane %v2260_v41, 5  ;;  %v4470_v7 = vrot.slane %v4468_v24, 4 }
 0x12d   : > { %5901 = vmatmul.mubr.msk.bf16.gmra.mrb[28].mxu0 %vm694_vm3, %v5393_v46  ;;  %v5444_v46 = vcombine.low %v4371_v35, %v4374_v34  ;;  %v2266_v35 = vshll.u32 %v6322_v39, 16  ;;  %v2270_v34 = vshrl.u32 %v6322_v39, 16 }
 0x12e   : > { %5749 = vmatmul.mubr.msk.bf16.gmra.mrb[12].mxu1 %vm694_vm3, %v6270_v12  ;;  %5906 = vmatprep.mubr.msk.bf16.mxu0 %vm694_vm3, %v5443_v17  ;;  %v4387_v12 = vrot.slane %v8287_v29, 5  ;;  %v5425_v17 = vld [vmem:[%s6425_s27 + $0xcc] sm:$0xe]  ;;  %v7971_v55 = vsel %vm6677_vm7, %v4470_v7, %v4471_v49 }
 0x12f   : > { %5752 = vmatprep.mubr.msk.bf16.mxu1 %vm694_vm3, %v6271_v11  ;;  %v6273_v11 = vld [vmem:[%s6425_s27 + $0x84] sm:$0xff]   ;;  %v5441_v52 = vrot.slane %v5425_v17, 9  ;;  %v2272_v28 = vrot.slane %v2270_v34, 4  ;;  %v6323_v17 = vld [vmem:[%s6425_s27 + $0x74] sm:$0x1] }
 0x130   : > { %v4388_v2 = vsel %vm6677_vm7, %v4386_v47, %v4387_v12  ;;  %v5148_v47 = vld [vmem:[%s6425_s27 + $0x84] sm:$0xf]  ;;  %v2263_v12 = vor.u32 %v2262_v25, %v2259_v23  ;;  %v6277_v34 = vld [vmem:[%s6425_s27 + $0xb4] sm:$0xff]  }
 0x131   : > { %v7966_v5 = vsel %vm6677_vm7, %v5441_v52, %v4468_v24  ;;  %v5446_v61 = vcombine.low %v4385_v6, %v4388_v2  ;;  %v2308_v18 = vshll.u32 %v5148_v47, 16  ;;  %v5151_v6 = vld [vmem:[%s6425_s27 + $0x90] sm:$0xf]  ;;  %v6276_v2 = vld [vmem:[%s6425_s27 + $0xa8] sm:$0xff]  }
 0x132   : > { %v5458_v29 = vcombine.low %v7966_v5, %v7971_v55  ;;  %v2264_v52 = vrot.slane %v2263_v12, 4  ;;  %v2329_v23 = vshrl.u32 %v5151_v6, 16  ;;  %v2332_v25 = vshll.u32 %v5151_v6, 16 }
 0x133   : > { %v2362_v12 = vshll.u32 %v6326_v60, 16 }
 0x134   : > { %v2334_v14 = vrot.slane %v2332_v25, 5  ;;  %v6329_v25 = vld [vmem:[%s6425_s27 + $0xa4] sm:$0x1] }
 0x135   : > { %5907 = vmatmul.mubr.msk.bf16.vlgmr.msra.gmra.mrb[0].mxu0 %vm694_vm3, %v5444_v46  ;;  %v2268_v46 = vrot.slane %v2266_v35, 5  ;;  %v5154_v35 = vld [vmem:[%s6425_s27 + $0x9c] sm:$0xf]  ;;  %v8013_v6 = vrot.slane %v2362_v12, 5 }
 0x136   : > { %5753 = vmatmul.mubr.msk.bf16.gmra.mrb[16].mxu1 %vm694_vm3, %v6272_v30  ;;  %5910 = vmatprep.mubr.msk.bf16.mxu0 %vm694_vm3, %v5445_v9  ;;  %v2276_v30 = vshll.u32 %v6323_v17, 16  ;;  %v2305_v9 = vshrl.u32 %v5148_v47, 16  ;;  %v2356_v47 = vshll.u32 %v5154_v35, 16  ;;  %v6327_v17 = vld [vmem:[%s6425_s27 + $0x8c] sm:$0x1] }
 0x137   : > { %5756 = vmatprep.mubr.msk.bf16.mxu1 %vm694_vm3, %v6273_v11  ;;  %v2273_v13 = vor.u32 %v2272_v28, %v2268_v46  ;;  %v6324_v11 = vld [vmem:[%s6425_s27 + $0x88] sm:$0xf]  ;;  %v2269_v7 = vsel %vm6451_vm4, %v2264_v52, %v2268_v46 }
 0x138   : > { %v2314_v19 = vshll.u32 %v6324_v11, 16  ;;  %v2318_v41 = vshrl.u32 %v6324_v11, 16  ;;  %v2278_v0 = vrot.slane %v2276_v30, 5  ;;  %v2307_v36 = vrot.slane %v2305_v9, 4 }
 0x139   : > { %v2274_v39 = vrot.slane %v2273_v13, 4  ;;  %v2324_v30 = vshll.u32 %v6327_v17, 16  ;;  %v2331_v9 = vrot.slane %v2329_v23, 4  ;;  %v2358_v11 = vrot.slane %v2356_v47, 5 }
 0x13a   : > { %v7990_v24 = vrot.slane %v2314_v19, 5  ;;  %v2320_v49 = vrot.slane %v2318_v41, 4  ;;  %v6278_v19 = vld [vmem:[%s6425_s27 + $0xc0] sm:$0xff]  }
 0x13b   : > { %v2279_v46 = vsel %vm6451_vm4, %v2274_v39, %v2278_v0  ;;  %v5157_v39 = vld [vmem:[%s6425_s27 + $0xa8] sm:$0xf] }
 0x13c   : > { %v2321_v13 = vor.u32 %v2320_v49, %v7990_v24  ;;  %v5175_v41 = vcombine.low %v2269_v7, %v2279_v46  ;;  %v2372_v7 = vshll.u32 %v6329_v25, 16  ;;  %v2380_v45 = vshll.u32 %v5157_v39, 16 }
 0x13d   : > { %5911 = vmatmul.mubr.msk.bf16.gmra.mrb[4].mxu0 %vm694_vm3, %v5446_v61  ;;  %v6325_v61 = vld [vmem:[%s6425_s27 + $0x94] sm:$0xf] }
 0x13e   : > { %5757 = vmatmul.mubr.msk.bf16.gmra.mrb[20].mxu1 %vm694_vm3, %v6274_v51  ;;  %5914 = vmatprep.mubr.msk.bf16.mxu0 %vm694_vm3, %v5447_v10  ;;  %v2310_v10 = vrot.slane %v2308_v18, 5  ;;  %v2338_v51 = vshll.u32 %v6325_v61, 16  ;;  %v2342_v28 = vshrl.u32 %v6325_v61, 16  ;;  %v2322_v0 = vrot.slane %v2321_v13, 4 }
 0x13f   : > { %5760 = vmatprep.mubr.msk.bf16.mxu1 %vm694_vm3, %v6275_v21  ;;  %v2353_v21 = vshrl.u32 %v5154_v35, 16  ;;  %v6328_v35 = vld [vmem:[%s6425_s27 + $0x98] sm:$0x1]  ;;  %v2377_v61 = vshrl.u32 %v5157_v39, 16  ;;  %v5163_v39 = vld [vmem:[%s6425_s27 + $0xc0] sm:$0xf] }
 0x140   : > { %v2311_v15 = vor.u32 %v2310_v10, %v2307_v36  ;;  %v8010_v26 = vrot.slane %v2338_v51, 5  ;;  %v2326_v36 = vrot.slane %v2324_v30, 5  ;;  %v2335_v10 = vor.u32 %v2334_v14, %v2331_v9  ;;  %v5160_v51 = vld [vmem:[%s6425_s27 + $0xb4] sm:$0xf] }
 0x141   : > { %v2355_v18 = vrot.slane %v2353_v21, 4  ;;  %v2390_v21 = vshrl.u32 %v6330_v27, 16  ;;  %v2401_v20 = vshrl.u32 %v5160_v51, 16  ;;  %v2404_v42 = vshll.u32 %v5160_v51, 16 }
 0x142   : > { %v2312_v52 = vrot.slane %v2311_v15, 4  ;;  %v2327_v46 = vsel %vm6451_vm4, %v2322_v0, %v2326_v36  ;;  %v2336_v15 = vrot.slane %v2335_v10, 4  ;;  %v2374_v30 = vrot.slane %v2372_v7, 5 }
 0x143   : > { %v2359_v23 = vor.u32 %v2358_v11, %v2355_v18  ;;  %v2379_v9 = vrot.slane %v2377_v61, 4  ;;  %v2392_v11 = vrot.slane %v2390_v21, 4  ;;  %v6334_v61 = vld [vmem:[%s6425_s27 + $0xbc] sm:$0x1] }
 0x144   : > { %v2317_v47 = vsel %vm6451_vm4, %v2312_v52, %v7990_v24  ;;  %v2341_v0 = vsel %vm6451_vm4, %v2336_v15, %v8010_v26  ;;  %v2420_v22 = vshll.u32 %v6334_v61, 16 }
 0x145   : > { %5915 = vmatmul.mubr.msk.bf16.gmra.mrb[8].mxu0 %vm694_vm3, %v5448_v40  ;;  %v2366_v40 = vshrl.u32 %v6326_v60, 16  ;;  %v2360_v17 = vrot.slane %v2359_v23, 4  ;;  %v5177_v24 = vcombine.low %v2317_v47, %v2327_v46 }
 0x146   : > { %5761 = vmatmul.mubr.msk.bf16.gmra.mrb[24].mxu1 %vm694_vm3, %v6276_v2  ;;  %5918 = vmatprep.mubr.msk.bf16.mxu0 %vm694_vm3, %v5449_v54  ;;  %v2344_v54 = vrot.slane %v2342_v28, 4 }
 0x147   : > { %5764 = vmatprep.mubr.msk.bf16.mxu1 %vm694_vm3, %v6277_v34  ;;  %v2368_v2 = vrot.slane %v2366_v40, 4  ;;  %v2348_v34 = vshll.u32 %v6328_v35, 16  ;;  %v2365_v10 = vsel %vm6451_vm4, %v2360_v17, %v8013_v6  ;;  %v2446_v17 = vrot.slane %v2444_v57, 5 }
 0x148   : > { %v2345_v49 = vor.u32 %v2344_v54, %v8010_v26  ;;  %v2382_v54 = vrot.slane %v2380_v45, 5  ;;  %v6332_v26 = vld [vmem:[%s6425_s27 + $0xb0] sm:$0x1] }
 0x149   : > { %v2369_v28 = vor.u32 %v2368_v2, %v8013_v6  ;;  %v2350_v60 = vrot.slane %v2348_v34, 5  ;;  %v2396_v35 = vshll.u32 %v6332_v26, 16  ;;  %v2425_v34 = vshrl.u32 %v5163_v39, 16 }
 0x14a   : > { %v2346_v13 = vrot.slane %v2345_v49, 4  ;;  %v2383_v38 = vor.u32 %v2382_v54, %v2379_v9  ;;  %v2428_v6 = vshll.u32 %v5163_v39, 16  ;;  %v6333_v49 = vld [vmem:[%s6425_s27 + $0xc4] sm:$0xf] }
 0x14b   : > { %v2370_v14 = vrot.slane %v2369_v28, 4  ;;  %v2434_v23 = vshll.u32 %v6333_v49, 16  ;;  %v2438_v25 = vshrl.u32 %v6333_v49, 16  ;;  %v2398_v45 = vrot.slane %v2396_v35, 5 }
 0x14c   : > { %v2351_v36 = vsel %vm6451_vm4, %v2346_v13, %v2350_v60  ;;  %v2384_v51 = vrot.slane %v2383_v38, 4  ;;  %v2422_v60 = vrot.slane %v2420_v22, 5 }
 0x14d   : > { %5919 = vmatmul.mubr.msk.bf16.gmra.mrb[12].mxu0 %vm694_vm3, %v5450_v53  ;;  %v2386_v53 = vshll.u32 %v6330_v27, 16  ;;  %v2375_v59 = vsel %vm6451_vm4, %v2370_v14, %v2374_v30  ;;  %v5178_v44 = vcombine.low %v2341_v0, %v2351_v36  ;;  %v2427_v27 = vrot.slane %v2425_v34, 4 }
 0x14e   : > { %5765 = vmatmul.mubr.msk.bf16.gmra.mrb[28].mxu1 %vm694_vm3, %v6278_v19  ;;  %5922 = vmatprep.mubr.msk.bf16.mxu0 %vm694_vm3, %v5451_v33  ;;  %v6331_v33 = vld [vmem:[%s6425_s27 + $0xb8] sm:$0xf]  ;;  %v2403_v19 = vrot.slane %v2401_v20, 4  ;;  %v2436_v21 = vrot.slane %v2434_v23, 5  ;;  %v2440_v47 = vrot.slane %v2438_v25, 4 }
 0x14f   : > { %5786 = vmatprep.mubr.msk.bf16.mxu1 %vm694_vm3, %v5175_v41  ;;  %v2410_v12 = vshll.u32 %v6331_v33, 16  ;;  %v2414_v40 = vshrl.u32 %v6331_v33, 16  ;;  %v2388_v18 = vrot.slane %v2386_v53, 5  ;;  %v2406_v41 = vrot.slane %v2404_v42, 5 }
 0x150   : > { %v2430_v53 = vrot.slane %v2428_v6, 5 }
 0x151   : > { %v2412_v52 = vrot.slane %v2410_v12, 5  ;;  %v2416_v2 = vrot.slane %v2414_v40, 4  ;;  %v2389_v20 = vsel %vm6451_vm4, %v2384_v51, %v2388_v18  ;;  %v2441_v12 = vor.u32 %v2440_v47, %v2436_v21 }
 0x152   : > { %v2431_v33 = vor.u32 %v2430_v53, %v2427_v27 }
 0x153   : > { %v2417_v7 = vor.u32 %v2416_v2, %v2412_v52  ;;  %v2442_v13 = vrot.slane %v2441_v12, 4  ;;  %v8105_v2 = vld [vmem:[%s8218_s1] ss:$0 sm:$0xff] }
 0x154   : > { %v2432_v40 = vrot.slane %v2431_v33, 4 }
 0x155   : > { %5923 = vmatmul.mubr.msk.bf16.gmra.mrb[16].mxu0 %vm694_vm3, %v5452_v37  ;;  %v2393_v37 = vor.u32 %v2392_v11, %v2388_v18  ;;  %v2418_v15 = vrot.slane %v2417_v7, 4  ;;  %v2447_v9 = vsel %vm6451_vm4, %v2442_v13, %v2446_v17 }
 0x156   : > { %5787 = vmatmul.mubr.msk.bf16.vlgmr.msra.gmra.mrb[16].mxu1 %vm694_vm3, %v7819_v1  ;;  %5926 = vmatprep.mubr.msk.bf16.mxu0 %vm694_vm3, %v5453_v3  ;;  %v2407_v1 = vor.u32 %v2406_v41, %v2403_v19  ;;  %v5179_v3 = vcombine.low %v2365_v10, %v2375_v59  ;;  %v2437_v30 = vsel %vm6451_vm4, %v2432_v40, %v2436_v21 }
 0x157   : > { %5790 = vmatprep.mubr.msk.bf16.mxu1 %vm694_vm3, %v5177_v24  ;;  %v2394_v28 = vrot.slane %v2393_v37, 4  ;;  %v2423_v48 = vsel %vm6451_vm4, %v2418_v15, %v2422_v60  ;;  %v5182_v14 = vcombine.low %v2437_v30, %v2447_v9 }
 0x158   : > { %v2408_v46 = vrot.slane %v2407_v1, 4 }
 0x159   : > { %v2399_v42 = vsel %vm6451_vm4, %v2394_v28, %v2398_v45 }
 0x15a   : > { %v5180_v62 = vcombine.low %v2389_v20, %v2399_v42 }
 0x15d   : > { %5927 = vmatmul.mubr.msk.bf16.gmra.mrb[20].mxu0 %vm694_vm3, %v5454_v8  ;;  %v2413_v8 = vsel %vm6451_vm4, %v2408_v46, %v2412_v52 }
 0x15e   : > { %5791 = vmatmul.mubr.msk.bf16.gmra.mrb[20].mxu1 %vm694_vm3, %v5178_v44  ;;  %5930 = vmatprep.mubr.msk.bf16.mxu0 %vm694_vm3, %v5455_v56  ;;  %v5181_v56 = vcombine.low %v2413_v8, %v2423_v48 }
 0x15f   : > { %5794 = vmatprep.mubr.msk.bf16.mxu1 %vm694_vm3, %v5179_v3 }
 0x165   : > { %5931 = vmatmul.mubr.msk.bf16.gmra.mrb[24].mxu0 %vm694_vm3, %v5456_v43 }
 0x166   : > { %5795 = vmatmul.mubr.msk.bf16.gmra.mrb[24].mxu1 %vm694_vm3, %v5180_v62  ;;  %5934 = vmatprep.mubr.msk.bf16.mxu0 %vm694_vm3, %v5457_v50 }
 0x167   : > { %5798 = vmatprep.mubr.msk.bf16.mxu1 %vm694_vm3, %v5181_v56 }
 0x16d   : > { %5935 = vmatmul.mubr.msk.bf16.gmra.mrb[28].mxu0 %vm694_vm3, %v5458_v29 }
 0x16e   : > { %5799 = vmatmul.mubr.msk.bf16.gmra.mrb[28].mxu1 %vm694_vm3, %v5182_v14 }
 0x1e9   : > { %v5738_v63 = vpop.f32.mrb[0].mxu1 }
 0x1ea   : > { %v1857_v4 = vpop.f32.mrb[1].mxu1 }
 0x1eb   : > { %v5739_v43 = vpop.f32.mrb[2].mxu1 }
 0x1ec   : > { %v1860_v16 = vpop.f32.mrb[3].mxu1 }
 0x1f1   : > { %v5742_v58 = vpop.f32.mrb[4].mxu1 }
 0x1f2   : > { %v1873_v50 = vpop.f32.mrb[5].mxu1 }
 0x1f3   : > { %v5743_v54 = vpop.f32.mrb[6].mxu1 }
 0x1f4   : > { %v1876_v18 = vpop.f32.mrb[7].mxu1 }
 0x1f9   : > { %v5746_v11 = vpop.f32.mrb[8].mxu1 }
 0x1fa   : > { %v1889_v32 = vpop.f32.mrb[9].mxu1 }
 0x1fb   : > { %v5747_v24 = vpop.f32.mrb[10].mxu1 }
 0x1fc   : > { %v1892_v19 = vpop.f32.mrb[11].mxu1 }
 0x201   : > { %v5750_v41 = vpop.f32.mrb[12].mxu1 }
 0x202   : > { %v1905_v52 = vpop.f32.mrb[13].mxu1 }
 0x203   : > { %v5751_v5 = vpop.f32.mrb[14].mxu1 }
 0x204   : > { %v1908_v55 = vpop.f32.mrb[15].mxu1 }
 0x208   : > { %v5908_v29 = vpop.f32.mrb[0].mxu0 }
 0x209   : > { %v5940_v39 = vadd.f32 %v5908_v29, %v5738_v63  ;;  %v4608_v0 = vpop.f32.mrb[1].mxu0 }
 0x20a   : > { %v5941_v36 = vadd.f32 %v4608_v0, %v1857_v4  ;;  %v5909_v10 = vpop.f32.mrb[2].mxu0 }
 0x20b   : > { %v4776_v59 = vadd.f32 %v5940_v39, %v8105_v2  ;;  %v5942_v38 = vadd.f32 %v5909_v10, %v5739_v43  ;;  %v4611_v37 = vpop.f32.mrb[3].mxu0 }
 0x20c   : > { %v4774_v26 = vadd.f32 %v5941_v36, %v8105_v2  ;;  %v5943_v35 = vadd.f32 %v4611_v37, %v1860_v16 }
 0x20d   : > { %4809 = vst.msk [vmem:[%s8110_s24 + $0x10] sm:$0xff] %vm4806_vm8, %v4776_v59  ;;  %v4777_v34 = vadd.f32 %v5942_v38, %v8105_v2 }
 0x20e   : > { %4807 = vst.msk [vmem:[%s8110_s24] sm:$0xff] %vm4806_vm8, %v4774_v26  ;;  %v4775_v6 = vadd.f32 %v5943_v35, %v8105_v2 }
 0x20f   : > { %4810 = vst.msk [vmem:[%s8110_s24 + $0x18] sm:$0xff] %vm4806_vm8, %v4777_v34 }
 0x210   : > { %4808 = vst.msk [vmem:[%s8110_s24 + $0x8] sm:$0xff] %vm4806_vm8, %v4775_v6  ;;  %v5912_v49 = vpop.f32.mrb[4].mxu0 }
 0x211   : > { %v5944_v23 = vadd.f32 %v5912_v49, %v5742_v58  ;;  %v4624_v25 = vpop.f32.mrb[5].mxu0 }
 0x212   : > { %v5945_v1 = vadd.f32 %v4624_v25, %v1873_v50  ;;  %v5913_v7 = vpop.f32.mrb[6].mxu0 }
 0x213   : > { %v4780_v61 = vadd.f32 %v5944_v23, %v8105_v2  ;;  %v5946_v22 = vadd.f32 %v5913_v7, %v5743_v54  ;;  %v4627_v44 = vpop.f32.mrb[7].mxu0 }
 0x214   : > { %v4778_v3 = vadd.f32 %v5945_v1, %v8105_v2  ;;  %v5947_v51 = vadd.f32 %v4627_v44, %v1876_v18 }
 0x215   : > { %4813 = vst.msk [vmem:[%s8110_s24 + $0x30] sm:$0xff] %vm4806_vm8, %v4780_v61  ;;  %v4781_v28 = vadd.f32 %v5946_v22, %v8105_v2 }
 0x216   : > { %4811 = vst.msk [vmem:[%s8110_s24 + $0x20] sm:$0xff] %vm4806_vm8, %v4778_v3  ;;  %v4779_v45 = vadd.f32 %v5947_v51, %v8105_v2 }
 0x217   : > { %4814 = vst.msk [vmem:[%s8110_s24 + $0x38] sm:$0xff] %vm4806_vm8, %v4781_v28 }
 0x218   : > { %4812 = vst.msk [vmem:[%s8110_s24 + $0x28] sm:$0xff] %vm4806_vm8, %v4779_v45  ;;  %v5916_v27 = vpop.f32.mrb[8].mxu0 }
 0x219   : > { %v5948_v53 = vadd.f32 %v5916_v27, %v5746_v11  ;;  %v4640_v21 = vpop.f32.mrb[9].mxu0 }
 0x21a   : > { %v5949_v47 = vadd.f32 %v4640_v21, %v1889_v32  ;;  %v5917_v46 = vpop.f32.mrb[10].mxu0 }
 0x21b   : > { %v4784_v15 = vadd.f32 %v5948_v53, %v8105_v2  ;;  %v5950_v60 = vadd.f32 %v5917_v46, %v5747_v24  ;;  %v4643_v20 = vpop.f32.mrb[11].mxu0 }
 0x21c   : > { %v4782_v42 = vadd.f32 %v5949_v47, %v8105_v2  ;;  %v5951_v33 = vadd.f32 %v4643_v20, %v1892_v19 }
 0x21d   : > { %4817 = vst.msk [vmem:[%s8110_s24 + $0x50] sm:$0xff] %vm4806_vm8, %v4784_v15  ;;  %v4785_v12 = vadd.f32 %v5950_v60, %v8105_v2 }
 0x21e   : > { %4815 = vst.msk [vmem:[%s8110_s24 + $0x40] sm:$0xff] %vm4806_vm8, %v4782_v42  ;;  %v4783_v31 = vadd.f32 %v5951_v33, %v8105_v2 }
 0x21f   : > { %4818 = vst.msk [vmem:[%s8110_s24 + $0x58] sm:$0xff] %vm4806_vm8, %v4785_v12 }
 0x220   : > { %4816 = vst.msk [vmem:[%s8110_s24 + $0x48] sm:$0xff] %vm4806_vm8, %v4783_v31  ;;  %v5920_v57 = vpop.f32.mrb[12].mxu0 }
 0x221   : > { %v5952_v8 = vadd.f32 %v5920_v57, %v5750_v41  ;;  %v4656_v48 = vpop.f32.mrb[13].mxu0 }
 0x222   : > { %v5953_v62 = vadd.f32 %v4656_v48, %v1905_v52  ;;  %v5921_v56 = vpop.f32.mrb[14].mxu0 }
 0x223   : > { %v4788_v40 = vadd.f32 %v5952_v8, %v8105_v2  ;;  %v5954_v13 = vadd.f32 %v5921_v56, %v5751_v5  ;;  %v4659_v17 = vpop.f32.mrb[15].mxu0 }
 0x224   : > { %v4786_v30 = vadd.f32 %v5953_v62, %v8105_v2  ;;  %v5955_v9 = vadd.f32 %v4659_v17, %v1908_v55 }
 0x225   : > { %4821 = vst.msk [vmem:[%s8110_s24 + $0x70] sm:$0xff] %vm4806_vm8, %v4788_v40  ;;  %v4789_v14 = vadd.f32 %v5954_v13, %v8105_v2 }
 0x226   : > { %4819 = vst.msk [vmem:[%s8110_s24 + $0x60] sm:$0xff] %vm4806_vm8, %v4786_v30  ;;  %v4787_v63 = vadd.f32 %v5955_v9, %v8105_v2 }
 0x227   : > { %4822 = vst.msk [vmem:[%s8110_s24 + $0x78] sm:$0xff] %vm4806_vm8, %v4789_v14 }
 0x228   : > { %4820 = vst.msk [vmem:[%s8110_s24 + $0x68] sm:$0xff] %vm4806_vm8, %v4787_v63  ;;  %v5924_v4 = vpop.f32.mrb[16].mxu0 }
 0x229   : > { %v5788_v43 = vpop.f32.mrb[16].mxu1  ;;  %v4672_v16 = vpop.f32.mrb[17].mxu0 }
 0x22a   : > { %v5956_v58 = vadd.f32 %v5924_v4, %v5788_v43  ;;  %v2647_v50 = vpop.f32.mrb[17].mxu1  ;;  %v5925_v54 = vpop.f32.mrb[18].mxu0 }
 0x22b   : > { %v5957_v18 = vadd.f32 %v4672_v16, %v2647_v50  ;;  %v5789_v11 = vpop.f32.mrb[18].mxu1  ;;  %v4675_v32 = vpop.f32.mrb[19].mxu0 }
 0x22c   : > { %v4792_v24 = vadd.f32 %v5956_v58, %v8105_v2  ;;  %v5958_v19 = vadd.f32 %v5925_v54, %v5789_v11  ;;  %v2650_v41 = vpop.f32.mrb[19].mxu1 }
 0x22d   : > { %v4790_v52 = vadd.f32 %v5957_v18, %v8105_v2  ;;  %v5959_v5 = vadd.f32 %v4675_v32, %v2650_v41 }
 0x22e   : > { %4825 = vst.msk [vmem:[%s8110_s24 + $0x90] sm:$0xff] %vm4806_vm8, %v4792_v24  ;;  %v4793_v55 = vadd.f32 %v5958_v19, %v8105_v2 }
 0x22f   : > { %4823 = vst.msk [vmem:[%s8110_s24 + $0x80] sm:$0xff] %vm4806_vm8, %v4790_v52  ;;  %v4791_v29 = vadd.f32 %v5959_v5, %v8105_v2 }
 0x230   : > { %4826 = vst.msk [vmem:[%s8110_s24 + $0x98] sm:$0xff] %vm4806_vm8, %v4793_v55  ;;  %v5928_v39 = vpop.f32.mrb[20].mxu0 }
 0x231   : > { %4824 = vst.msk [vmem:[%s8110_s24 + $0x88] sm:$0xff] %vm4806_vm8, %v4791_v29  ;;  %v5792_v0 = vpop.f32.mrb[20].mxu1  ;;  %v4688_v36 = vpop.f32.mrb[21].mxu0 }
 0x232   : > { %v5960_v10 = vadd.f32 %v5928_v39, %v5792_v0  ;;  %v2663_v59 = vpop.f32.mrb[21].mxu1  ;;  %v5929_v38 = vpop.f32.mrb[22].mxu0 }
 0x233   : > { %v5961_v37 = vadd.f32 %v4688_v36, %v2663_v59  ;;  %v5793_v26 = vpop.f32.mrb[22].mxu1  ;;  %v4691_v35 = vpop.f32.mrb[23].mxu0 }
 0x234   : > { %v4796_v34 = vadd.f32 %v5960_v10, %v8105_v2  ;;  %v5962_v6 = vadd.f32 %v5929_v38, %v5793_v26  ;;  %v2666_v49 = vpop.f32.mrb[23].mxu1 }
 0x235   : > { %v4794_v23 = vadd.f32 %v5961_v37, %v8105_v2  ;;  %v5963_v25 = vadd.f32 %v4691_v35, %v2666_v49 }
 0x236   : > { %4829 = vst.msk [vmem:[%s8110_s24 + $0xb0] sm:$0xff] %vm4806_vm8, %v4796_v34  ;;  %v4797_v1 = vadd.f32 %v5962_v6, %v8105_v2 }
 0x237   : > { %4827 = vst.msk [vmem:[%s8110_s24 + $0xa0] sm:$0xff] %vm4806_vm8, %v4794_v23  ;;  %v4795_v7 = vadd.f32 %v5963_v25, %v8105_v2 }
 0x238   : > { %4830 = vst.msk [vmem:[%s8110_s24 + $0xb8] sm:$0xff] %vm4806_vm8, %v4797_v1  ;;  %v5932_v61 = vpop.f32.mrb[24].mxu0 }
 0x239   : > { %4828 = vst.msk [vmem:[%s8110_s24 + $0xa8] sm:$0xff] %vm4806_vm8, %v4795_v7  ;;  %v5796_v22 = vpop.f32.mrb[24].mxu1  ;;  %v4704_v44 = vpop.f32.mrb[25].mxu0 }
 0x23a   : > { %v5964_v3 = vadd.f32 %v5932_v61, %v5796_v22  ;;  %v2679_v51 = vpop.f32.mrb[25].mxu1  ;;  %v5933_v28 = vpop.f32.mrb[26].mxu0 }
 0x23b   : > { %v5965_v45 = vadd.f32 %v4704_v44, %v2679_v51  ;;  %v5797_v27 = vpop.f32.mrb[26].mxu1  ;;  %v4707_v53 = vpop.f32.mrb[27].mxu0 }
 0x23c   : > { %v4800_v21 = vadd.f32 %v5964_v3, %v8105_v2  ;;  %v5966_v47 = vadd.f32 %v5933_v28, %v5797_v27  ;;  %v2682_v46 = vpop.f32.mrb[27].mxu1 }
 0x23d   : > { %v4798_v15 = vadd.f32 %v5965_v45, %v8105_v2  ;;  %v5967_v60 = vadd.f32 %v4707_v53, %v2682_v46 }
 0x23e   : > { %4833 = vst.msk [vmem:[%s8110_s24 + $0xd0] sm:$0xff] %vm4806_vm8, %v4800_v21  ;;  %v4801_v20 = vadd.f32 %v5966_v47, %v8105_v2 }
 0x23f   : > { %4831 = vst.msk [vmem:[%s8110_s24 + $0xc0] sm:$0xff] %vm4806_vm8, %v4798_v15  ;;  %v4799_v42 = vadd.f32 %v5967_v60, %v8105_v2 }
 0x240   : > { %4834 = vst.msk [vmem:[%s8110_s24 + $0xd8] sm:$0xff] %vm4806_vm8, %v4801_v20  ;;  %v5936_v33 = vpop.f32.mrb[28].mxu0 }
 0x241   : > { %4832 = vst.msk [vmem:[%s8110_s24 + $0xc8] sm:$0xff] %vm4806_vm8, %v4799_v42  ;;  %v5800_v12 = vpop.f32.mrb[28].mxu1  ;;  %v4720_v31 = vpop.f32.mrb[29].mxu0 }
 0x242   : > { %v5968_v57 = vadd.f32 %v5936_v33, %v5800_v12  ;;  %v2695_v8 = vpop.f32.mrb[29].mxu1  ;;  %v5937_v48 = vpop.f32.mrb[30].mxu0 }
 0x243   : > { %v5969_v62 = vadd.f32 %v4720_v31, %v2695_v8  ;;  %v5801_v56 = vpop.f32.mrb[30].mxu1  ;;  %v4723_v40 = vpop.f32.mrb[31].mxu0 }
 0x244   : > { %v4804_v13 = vadd.f32 %v5968_v57, %v8105_v2  ;;  %v5970_v17 = vadd.f32 %v5937_v48, %v5801_v56  ;;  %v2698_v30 = vpop.f32.mrb[31].mxu1 }
 0x245   : > { %v4802_v9 = vadd.f32 %v5969_v62, %v8105_v2  ;;  %v5971_v14 = vadd.f32 %v4723_v40, %v2698_v30 }
 0x246   : > { %4837 = vst.msk [vmem:[%s8110_s24 + $0xf0] sm:$0xff] %vm4806_vm8, %v4804_v13  ;;  %v4805_v63 = vadd.f32 %v5970_v17, %v8105_v2 }
 0x247   : > { %4835 = vst.msk [vmem:[%s8110_s24 + $0xe0] sm:$0xff] %vm4806_vm8, %v4802_v9  ;;  %v4803_v4 = vadd.f32 %v5971_v14, %v8105_v2 }
 0x248   : > { %4838 = vst.msk [vmem:[%s8110_s24 + $0xf8] sm:$0xff] %vm4806_vm8, %v4805_v63 }
 0x249   : > { %4836 = vst.msk [vmem:[%s8110_s24 + $0xe8] sm:$0xff] %vm4806_vm8, %v4803_v4 }
 0x24a PF: > { %s13_s14 = sadd.s32 1, %s6358_s14   ;;  %s8288_s12 = smov %s6354_s13 }
 0x24b   : > { %p10_p5 = scmp.ge.s32.totalorder %s13_s14, 4   ;;  %s8289_s13 = smov %s8291_s15 }
 0x24d   :  { %12 = sbr.rel (!%p10_p5) target bundleno = 2 (0x2), region = 72 }

</bundles_post_ra>
